<compile_context>
chip_gen: v6e
topology: v6e:2x2x1
jax: 0.10.0
libtpu: 0.0.40
codegen_flags: <defaults>
</compile_context>

<pallas_src>
import functools

import jax
import jax.numpy as jnp
from jax.experimental import pallas as pl
from jax.experimental.pallas import tpu as pltpu


# ------------------------------ fused kernel ------------------------------- #

def _stack_gnn_kernel(
    # constant inputs
    nf_ref, ef_ref, sd_ref, ss_ref, sdt_ref,
    wn_enc_ref, bn_enc_ref, we_enc_ref, be_enc_ref,
    # per-layer (stacked) weights, selected by the grid index
    wd_ref, ws_ref, we_ref, be_ref, watt_ref, wmsg_ref,
    wself_ref, wagg_ref, bn_ref,
    # output-head weights
    w_nout_ref, b_nout_ref, w_eout_ref, b_eout_ref,
    # outputs
    unf_ref, uef_ref,
    # VMEM-resident state
    hn_s, he_s,
):
    f32 = jnp.float32
    layer = pl.program_id(0)

    # ---- layer 0: node / edge encoders write the VMEM-resident state ------ #
    @pl.when(layer == 0)
    def _():
        hn_s[...] = jnp.maximum(
            jnp.dot(nf_ref[...], wn_enc_ref[...], preferred_element_type=f32)
            + bn_enc_ref[...], 0.0)
        he_s[...] = jnp.maximum(
            jnp.dot(ef_ref[...], we_enc_ref[...], preferred_element_type=f32)
            + be_enc_ref[...], 0.0)

    hn = hn_s[...]                                   # [N, Hn]
    he = he_s[...]                                   # [E, He]

    # ---- edge update: he' = relu(he@We + hd[dst] + hs[src] + be) ---------- #
    # dst/src broadcasts are MXU matmuls with constant one-hot selectors.
    hd = jnp.dot(hn, wd_ref[0], preferred_element_type=f32)        # [N, He]
    hs = jnp.dot(hn, ws_ref[0], preferred_element_type=f32)        # [N, He]
    he_new = (jnp.dot(he, we_ref[0], preferred_element_type=f32)
              + jnp.dot(sd_ref[...], hd, preferred_element_type=f32)
              + jnp.dot(ss_ref[...], hs, preferred_element_type=f32)
              + be_ref[0])
    he_new = jnp.maximum(he_new, 0.0)                               # [E, He]
    he_s[...] = he_new

    # ---- attention (softmax over incoming edges per dst) + aggregation ---- #
    logit = jnp.sum(he_new * watt_ref[0], axis=1, keepdims=True)    # [E, 1]
    # global max shift -> identical softmax, avoids grouped max.
    logit = logit - jnp.max(logit, axis=0, keepdims=True)
    p = jnp.exp(logit)                                              # [E, 1]
    msg = jnp.dot(he_new, wmsg_ref[0], preferred_element_type=f32)  # [E, Hn]
    p_b = jnp.broadcast_to(p, msg.shape)                            # [E, Hn]
    sdt = sdt_ref[...]                                              # [N, E]
    wsum = jnp.dot(sdt, p_b * msg, preferred_element_type=f32)      # [N, Hn]
    denom = jnp.dot(sdt, p_b, preferred_element_type=f32)           # [N, Hn]
    agg = wsum / denom                                              # [N, Hn]

    # ---- node update ------------------------------------------------------ #
    hn_new = jnp.maximum(
        jnp.dot(hn, wself_ref[0], preferred_element_type=f32)
        + jnp.dot(agg, wagg_ref[0], preferred_element_type=f32)
        + bn_ref[0], 0.0)
    hn_s[...] = hn_new

    # ---- output heads (single-Linear MLPs) on the last layer only --------- #
    @pl.when(layer == pl.num_programs(0) - 1)
    def _():
        unf_ref[...] = (jnp.dot(hn_new, w_nout_ref[...],
                                preferred_element_type=f32)
                        + b_nout_ref[...]).astype(unf_ref.dtype)
        uef_ref[...] = (jnp.dot(he_new, w_eout_ref[...],
                                preferred_element_type=f32)
                        + b_eout_ref[...]).astype(uef_ref.dtype)


# --------------------------------- wrapper --------------------------------- #

def _const_spec(a):
    nd = a.ndim
    return pl.BlockSpec(a.shape, lambda l, _n=nd: (0,) * _n)


def _layer_spec(a):
    tail = a.shape[1:]
    return pl.BlockSpec((1,) + tail, lambda l, _k=len(tail): (l,) + (0,) * _k)


@functools.partial(jax.jit, static_argnames=("n_nodes",))
def stack_gnn_forward(params, nf, ef, *, n_nodes):
    n = n_nodes
    e_cnt = n * n
    assert ef.shape[0] == e_cnt, "expect dense dst-major edges: e = dst*N + src"

    hn_dim = params["w_self"].shape[-1]
    he_dim = params["w_e"].shape[-1]
    nf_out = params["w_nout"].shape[-1]
    ef_out = params["w_eout"].shape[-1]
    n_layers = params["w_d"].shape[0]

    # Constant dst/src selector matrices (dst-major edge ordering); built once,
    # constant-folded by XLA under jit.
    eidx = jnp.arange(e_cnt, dtype=jnp.int32)
    nidx = jnp.arange(n, dtype=jnp.int32)
    sd = (eidx[:, None] // n == nidx[None, :]).astype(jnp.float32)   # [E, N]
    ss = (eidx[:, None] % n == nidx[None, :]).astype(jnp.float32)    # [E, N]
    sdt = sd.T                                                       # [N, E]

    inputs = (
        nf, ef, sd, ss, sdt,
        params["wn_enc"], params["bn_enc"], params["we_enc"], params["be_enc"],
        params["w_d"], params["w_s"], params["w_e"], params["b_e"],
        params["w_att"], params["w_msg"], params["w_self"], params["w_agg"],
        params["b_n"],
        params["w_nout"], params["b_nout"], params["w_eout"], params["b_eout"],
    )
    in_specs = [
        _const_spec(nf), _const_spec(ef), _const_spec(sd), _const_spec(ss),
        _const_spec(sdt),
        _const_spec(params["wn_enc"]), _const_spec(params["bn_enc"]),
        _const_spec(params["we_enc"]), _const_spec(params["be_enc"]),
        _layer_spec(params["w_d"]), _layer_spec(params["w_s"]),
        _layer_spec(params["w_e"]), _layer_spec(params["b_e"]),
        _layer_spec(params["w_att"]), _layer_spec(params["w_msg"]),
        _layer_spec(params["w_self"]), _layer_spec(params["w_agg"]),
        _layer_spec(params["b_n"]),
        _const_spec(params["w_nout"]), _const_spec(params["b_nout"]),
        _const_spec(params["w_eout"]), _const_spec(params["b_eout"]),
    ]

    grid_spec = pltpu.PrefetchScalarGridSpec(
        num_scalar_prefetch=0,
        grid=(n_layers,),
        in_specs=in_specs,
        out_specs=[
            pl.BlockSpec((n, nf_out), lambda l: (0, 0)),
            pl.BlockSpec((e_cnt, ef_out), lambda l: (0, 0)),
        ],
        scratch_shapes=[
            pltpu.VMEM((n, hn_dim), jnp.float32),      # node state
            pltpu.VMEM((e_cnt, he_dim), jnp.float32),  # edge state
        ],
    )

    unf, uef = pl.pallas_call(
        _stack_gnn_kernel,
        out_shape=(jax.ShapeDtypeStruct((n, nf_out), jnp.float32),
                   jax.ShapeDtypeStruct((e_cnt, ef_out), jnp.float32)),
        grid_spec=grid_spec,
        compiler_params=pltpu.CompilerParams(
            dimension_semantics=("arbitrary",)),       # state carries per layer
    )(*inputs)
    return unf, uef


# --------------------------- parameter construction ------------------------ #

def _dense_init(key, fan_in, fan_out):
    kw, kb = jax.random.split(key)
    w = jax.random.normal(kw, (fan_in, fan_out), jnp.float32) / jnp.sqrt(
        jnp.float32(fan_in))
    b = 0.01 * jax.random.normal(kb, (fan_out,), jnp.float32)
    return w, b


def init_params(key, nf_dim, ef_dim, hnf, hef, nf_out, ef_out, n_layers):
    assert n_layers >= 1
    keys = jax.random.split(key, 4 + n_layers)
    p = {}
    w, b = _dense_init(keys[0], nf_dim, hnf)
    p["wn_enc"], p["bn_enc"] = w, b.reshape(1, hnf)
    w, b = _dense_init(keys[1], ef_dim, hef)
    p["we_enc"], p["be_enc"] = w, b.reshape(1, hef)

    wd, ws, we, be, watt, wmsg, wself, wagg, bn = ([] for _ in range(9))
    for l in range(n_layers):
        k = jax.random.split(keys[2 + l], 7)
        a, _ = _dense_init(k[0], hnf, hef); wd.append(a)
        a, _ = _dense_init(k[1], hnf, hef); ws.append(a)
        a, bb = _dense_init(k[2], hef, hef); we.append(a); be.append(bb.reshape(1, hef))
        watt.append(jax.random.normal(k[3], (1, hef), jnp.float32)
                    / jnp.sqrt(jnp.float32(hef)))
        a, _ = _dense_init(k[4], hef, hnf); wmsg.append(a)
        a, _ = _dense_init(k[5], hnf, hnf); wself.append(a)
        a, bb = _dense_init(k[6], hnf, hnf); wagg.append(a); bn.append(bb.reshape(1, hnf))

    p["w_d"] = jnp.stack(wd)        # [L, hnf, hef]
    p["w_s"] = jnp.stack(ws)        # [L, hnf, hef]
    p["w_e"] = jnp.stack(we)        # [L, hef, hef]
    p["b_e"] = jnp.stack(be)        # [L, 1, hef]
    p["w_att"] = jnp.stack(watt)    # [L, 1, hef]
    p["w_msg"] = jnp.stack(wmsg)    # [L, hef, hnf]
    p["w_self"] = jnp.stack(wself)  # [L, hnf, hnf]
    p["w_agg"] = jnp.stack(wagg)    # [L, hnf, hnf]
    p["b_n"] = jnp.stack(bn)        # [L, 1, hnf]

    w, b = _dense_init(keys[2 + n_layers], hnf, nf_out)
    p["w_nout"], p["b_nout"] = w, b.reshape(1, nf_out)
    w, b = _dense_init(keys[3 + n_layers], hef, ef_out)
    p["w_eout"], p["b_eout"] = w, b.reshape(1, ef_out)
    return p


# ----------------------------------- main ----------------------------------- #

if __name__ == "__main__":
    N = 16                       # nodes
    E = N * N                    # dense fully-connected graph (incl. self loops)
    nf_dim, ef_dim = 8, 4
    hnf_dim, hef_dim = 32, 32
    nf_outdim, ef_outdim = 8, 4
    n_layers = 2

    key = jax.random.PRNGKey(0)
    k_nf, k_ef, k_p = jax.random.split(key, 3)
    nf = jax.random.normal(k_nf, (N, nf_dim), jnp.float32)
    ef = jax.random.normal(k_ef, (E, ef_dim), jnp.float32)   # dst-major edges

    params = init_params(k_p, nf_dim, ef_dim, hnf_dim, hef_dim,
                         nf_outdim, ef_outdim, n_layers)

    unf, uef = stack_gnn_forward(params, nf, ef, n_nodes=N)
    jax.block_until_ready((unf, uef))

    assert unf.shape == (N, nf_outdim) and unf.dtype == jnp.float32
    assert uef.shape == (E, ef_outdim) and uef.dtype == jnp.float32
    assert bool(jnp.all(jnp.isfinite(unf))) and bool(jnp.all(jnp.isfinite(uef)))
    print("KERNEL_OK")
</pallas_src>

<mosaic_0001>
module attributes {stable_mosaic.version = 11 : i64} {
  func.func @_stack_gnn_kernel(%arg0: i32, %arg1: memref<16x8xf32, #tpu.memory_space<vmem>>, %arg2: memref<256x4xf32, #tpu.memory_space<vmem>>, %arg3: memref<256x16xf32, #tpu.memory_space<vmem>>, %arg4: memref<256x16xf32, #tpu.memory_space<vmem>>, %arg5: memref<16x256xf32, #tpu.memory_space<vmem>>, %arg6: memref<8x32xf32, #tpu.memory_space<vmem>>, %arg7: memref<1x32xf32, #tpu.memory_space<vmem>>, %arg8: memref<4x32xf32, #tpu.memory_space<vmem>>, %arg9: memref<1x32xf32, #tpu.memory_space<vmem>>, %arg10: memref<1x32x32xf32, #tpu.memory_space<vmem>>, %arg11: memref<1x32x32xf32, #tpu.memory_space<vmem>>, %arg12: memref<1x32x32xf32, #tpu.memory_space<vmem>>, %arg13: memref<1x1x32xf32, #tpu.memory_space<vmem>>, %arg14: memref<1x1x32xf32, #tpu.memory_space<vmem>>, %arg15: memref<1x32x32xf32, #tpu.memory_space<vmem>>, %arg16: memref<1x32x32xf32, #tpu.memory_space<vmem>>, %arg17: memref<1x32x32xf32, #tpu.memory_space<vmem>>, %arg18: memref<1x1x32xf32, #tpu.memory_space<vmem>>, %arg19: memref<32x8xf32, #tpu.memory_space<vmem>>, %arg20: memref<1x8xf32, #tpu.memory_space<vmem>>, %arg21: memref<32x4xf32, #tpu.memory_space<vmem>>, %arg22: memref<1x4xf32, #tpu.memory_space<vmem>>, %arg23: memref<16x8xf32, #tpu.memory_space<vmem>>, %arg24: memref<256x4xf32, #tpu.memory_space<vmem>>, %arg25: memref<16x32xf32, #tpu.memory_space<vmem>>, %arg26: memref<256x32xf32, #tpu.memory_space<vmem>>) attributes {dimension_semantics = [#tpu.dimension_semantics<arbitrary>], iteration_bounds = array<i64: 2>, scalar_prefetch = 0 : i64, scratch_operands = 2 : i64, tpu.core_type = #tpu.core_type<tc>, window_params = [{pipeline_mode = #tpu.pipeline_mode<synchronous>, transform_indices = @transform_0, window_bounds = array<i64: 16, 8>}, {pipeline_mode = #tpu.pipeline_mode<synchronous>, transform_indices = @transform_1, window_bounds = array<i64: 256, 4>}, {pipeline_mode = #tpu.pipeline_mode<synchronous>, transform_indices = @transform_2, window_bounds = array<i64: 256, 16>}, {pipeline_mode = #tpu.pipeline_mode<synchronous>, transform_indices = @transform_3, window_bounds = array<i64: 256, 16>}, {pipeline_mode = #tpu.pipeline_mode<synchronous>, transform_indices = @transform_4, window_bounds = array<i64: 16, 256>}, {pipeline_mode = #tpu.pipeline_mode<synchronous>, transform_indices = @transform_5, window_bounds = array<i64: 8, 32>}, {pipeline_mode = #tpu.pipeline_mode<synchronous>, transform_indices = @transform_6, window_bounds = array<i64: 1, 32>}, {pipeline_mode = #tpu.pipeline_mode<synchronous>, transform_indices = @transform_7, window_bounds = array<i64: 4, 32>}, {pipeline_mode = #tpu.pipeline_mode<synchronous>, transform_indices = @transform_8, window_bounds = array<i64: 1, 32>}, {transform_indices = @transform_9, window_bounds = array<i64: 1, 32, 32>}, {transform_indices = @transform_10, window_bounds = array<i64: 1, 32, 32>}, {transform_indices = @transform_11, window_bounds = array<i64: 1, 32, 32>}, {transform_indices = @transform_12, window_bounds = array<i64: 1, 1, 32>}, {transform_indices = @transform_13, window_bounds = array<i64: 1, 1, 32>}, {transform_indices = @transform_14, window_bounds = array<i64: 1, 32, 32>}, {transform_indices = @transform_15, window_bounds = array<i64: 1, 32, 32>}, {transform_indices = @transform_16, window_bounds = array<i64: 1, 32, 32>}, {transform_indices = @transform_17, window_bounds = array<i64: 1, 1, 32>}, {pipeline_mode = #tpu.pipeline_mode<synchronous>, transform_indices = @transform_18, window_bounds = array<i64: 32, 8>}, {pipeline_mode = #tpu.pipeline_mode<synchronous>, transform_indices = @transform_19, window_bounds = array<i64: 1, 8>}, {pipeline_mode = #tpu.pipeline_mode<synchronous>, transform_indices = @transform_20, window_bounds = array<i64: 32, 4>}, {pipeline_mode = #tpu.pipeline_mode<synchronous>, transform_indices = @transform_21, window_bounds = array<i64: 1, 4>}, {pipeline_mode = #tpu.pipeline_mode<synchronous>, transform_indices = @transform_22, window_bounds = array<i64: 16, 8>}, {pipeline_mode = #tpu.pipeline_mode<synchronous>, transform_indices = @transform_23, window_bounds = array<i64: 256, 4>}]} {
    %c0_i32 = arith.constant 0 : i32
    %0 = arith.cmpi eq, %arg0, %c0_i32 : i32
    %1 = arith.extui %0 : i1 to i32
    %c0_i32_0 = arith.constant 0 : i32
    %2 = arith.cmpi ne, %1, %c0_i32_0 : i32
    scf.if %2 {
      %c0_55 = arith.constant 0 : index
      %c0_56 = arith.constant 0 : index
      %65 = vector.load %arg1[%c0_55, %c0_56] : memref<16x8xf32, #tpu.memory_space<vmem>>, vector<16x8xf32>
      %c0_57 = arith.constant 0 : index
      %c0_58 = arith.constant 0 : index
      %66 = vector.load %arg6[%c0_57, %c0_58] : memref<8x32xf32, #tpu.memory_space<vmem>>, vector<8x32xf32>
      %cst_59 = arith.constant dense<0.000000e+00> : vector<16x32xf32>
      %67 = tpu.matmul %65, %66, %cst_59 {dimension_numbers = #tpu.dot_dimension_numbers<[1], [0], [0], [1], [0, 0, 1, 1], [], []>} : vector<16x8xf32>, vector<8x32xf32>, vector<16x32xf32> -> vector<16x32xf32>
      %c0_60 = arith.constant 0 : index
      %c0_61 = arith.constant 0 : index
      %68 = vector.load %arg7[%c0_60, %c0_61] : memref<1x32xf32, #tpu.memory_space<vmem>>, vector<1x32xf32>
      %69 = vector.broadcast %68 : vector<1x32xf32> to vector<16x32xf32>
      %70 = arith.addf %67, %69 : vector<16x32xf32>
      %cst_62 = arith.constant 0.000000e+00 : f32
      %71 = vector.broadcast %cst_62 : f32 to vector<16x32xf32>
      %72 = arith.maximumf %70, %71 : vector<16x32xf32>
      %c0_63 = arith.constant 0 : index
      %c0_64 = arith.constant 0 : index
      %73 = vector.load %arg25[%c0_63, %c0_64] : memref<16x32xf32, #tpu.memory_space<vmem>>, vector<16x32xf32>
      tpu.vector_store %arg25[%c0_63, %c0_64], %72 {strides = array<i32>} : memref<16x32xf32, #tpu.memory_space<vmem>>, vector<16x32xf32>,
      %c0_65 = arith.constant 0 : index
      %c0_66 = arith.constant 0 : index
      %74 = vector.load %arg2[%c0_65, %c0_66] : memref<256x4xf32, #tpu.memory_space<vmem>>, vector<256x4xf32>
      %c0_67 = arith.constant 0 : index
      %c0_68 = arith.constant 0 : index
      %75 = vector.load %arg8[%c0_67, %c0_68] : memref<4x32xf32, #tpu.memory_space<vmem>>, vector<4x32xf32>
      %cst_69 = arith.constant dense<0.000000e+00> : vector<256x32xf32>
      %76 = tpu.matmul %74, %75, %cst_69 {dimension_numbers = #tpu.dot_dimension_numbers<[1], [0], [0], [1], [0, 0, 1, 1], [], []>} : vector<256x4xf32>, vector<4x32xf32>, vector<256x32xf32> -> vector<256x32xf32>
      %c0_70 = arith.constant 0 : index
      %c0_71 = arith.constant 0 : index
      %77 = vector.load %arg9[%c0_70, %c0_71] : memref<1x32xf32, #tpu.memory_space<vmem>>, vector<1x32xf32>
      %78 = vector.broadcast %77 : vector<1x32xf32> to vector<256x32xf32>
      %79 = arith.addf %76, %78 : vector<256x32xf32>
      %cst_72 = arith.constant 0.000000e+00 : f32
      %80 = vector.broadcast %cst_72 : f32 to vector<256x32xf32>
      %81 = arith.maximumf %79, %80 : vector<256x32xf32>
      %c0_73 = arith.constant 0 : index
      %c0_74 = arith.constant 0 : index
      %82 = vector.load %arg26[%c0_73, %c0_74] : memref<256x32xf32, #tpu.memory_space<vmem>>, vector<256x32xf32>
      tpu.vector_store %arg26[%c0_73, %c0_74], %81 {strides = array<i32>} : memref<256x32xf32, #tpu.memory_space<vmem>>, vector<256x32xf32>,
    } else {
    }
    %c0 = arith.constant 0 : index
    %c0_1 = arith.constant 0 : index
    %3 = vector.load %arg25[%c0, %c0_1] : memref<16x32xf32, #tpu.memory_space<vmem>>, vector<16x32xf32>
    %c0_2 = arith.constant 0 : index
    %c0_3 = arith.constant 0 : index
    %4 = vector.load %arg26[%c0_2, %c0_3] : memref<256x32xf32, #tpu.memory_space<vmem>>, vector<256x32xf32>
    %c0_4 = arith.constant 0 : index
    %c0_5 = arith.constant 0 : index
    %c0_6 = arith.constant 0 : index
    %5 = vector.load %arg10[%c0_4, %c0_5, %c0_6] : memref<1x32x32xf32, #tpu.memory_space<vmem>>, vector<1x32x32xf32>
    %6 = vector.shape_cast %5 : vector<1x32x32xf32> to vector<32x32xf32>
    %cst = arith.constant dense<0.000000e+00> : vector<16x32xf32>
    %7 = tpu.matmul %3, %6, %cst {dimension_numbers = #tpu.dot_dimension_numbers<[1], [0], [0], [1], [0, 0, 1, 1], [], []>} : vector<16x32xf32>, vector<32x32xf32>, vector<16x32xf32> -> vector<16x32xf32>
    %c0_7 = arith.constant 0 : index
    %c0_8 = arith.constant 0 : index
    %c0_9 = arith.constant 0 : index
    %8 = vector.load %arg11[%c0_7, %c0_8, %c0_9] : memref<1x32x32xf32, #tpu.memory_space<vmem>>, vector<1x32x32xf32>
    %9 = vector.shape_cast %8 : vector<1x32x32xf32> to vector<32x32xf32>
    %cst_10 = arith.constant dense<0.000000e+00> : vector<16x32xf32>
    %10 = tpu.matmul %3, %9, %cst_10 {dimension_numbers = #tpu.dot_dimension_numbers<[1], [0], [0], [1], [0, 0, 1, 1], [], []>} : vector<16x32xf32>, vector<32x32xf32>, vector<16x32xf32> -> vector<16x32xf32>
    %c0_11 = arith.constant 0 : index
    %c0_12 = arith.constant 0 : index
    %c0_13 = arith.constant 0 : index
    %11 = vector.load %arg12[%c0_11, %c0_12, %c0_13] : memref<1x32x32xf32, #tpu.memory_space<vmem>>, vector<1x32x32xf32>
    %12 = vector.shape_cast %11 : vector<1x32x32xf32> to vector<32x32xf32>
    %cst_14 = arith.constant dense<0.000000e+00> : vector<256x32xf32>
    %13 = tpu.matmul %4, %12, %cst_14 {dimension_numbers = #tpu.dot_dimension_numbers<[1], [0], [0], [1], [0, 0, 1, 1], [], []>} : vector<256x32xf32>, vector<32x32xf32>, vector<256x32xf32> -> vector<256x32xf32>
    %c0_15 = arith.constant 0 : index
    %c0_16 = arith.constant 0 : index
    %14 = vector.load %arg3[%c0_15, %c0_16] : memref<256x16xf32, #tpu.memory_space<vmem>>, vector<256x16xf32>
    %cst_17 = arith.constant dense<0.000000e+00> : vector<256x32xf32>
    %15 = tpu.matmul %14, %7, %cst_17 {dimension_numbers = #tpu.dot_dimension_numbers<[1], [0], [0], [1], [0, 0, 1, 1], [], []>} : vector<256x16xf32>, vector<16x32xf32>, vector<256x32xf32> -> vector<256x32xf32>
    %16 = arith.addf %13, %15 : vector<256x32xf32>
    %c0_18 = arith.constant 0 : index
    %c0_19 = arith.constant 0 : index
    %17 = vector.load %arg4[%c0_18, %c0_19] : memref<256x16xf32, #tpu.memory_space<vmem>>, vector<256x16xf32>
    %cst_20 = arith.constant dense<0.000000e+00> : vector<256x32xf32>
    %18 = tpu.matmul %17, %10, %cst_20 {dimension_numbers = #tpu.dot_dimension_numbers<[1], [0], [0], [1], [0, 0, 1, 1], [], []>} : vector<256x16xf32>, vector<16x32xf32>, vector<256x32xf32> -> vector<256x32xf32>
    %19 = arith.addf %16, %18 : vector<256x32xf32>
    %c0_21 = arith.constant 0 : index
    %c0_22 = arith.constant 0 : index
    %c0_23 = arith.constant 0 : index
    %20 = vector.load %arg13[%c0_21, %c0_22, %c0_23] : memref<1x1x32xf32, #tpu.memory_space<vmem>>, vector<1x1x32xf32>
    %21 = vector.shape_cast %20 : vector<1x1x32xf32> to vector<1x32xf32>
    %22 = vector.broadcast %21 : vector<1x32xf32> to vector<256x32xf32>
    %23 = arith.addf %19, %22 : vector<256x32xf32>
    %cst_24 = arith.constant 0.000000e+00 : f32
    %24 = vector.broadcast %cst_24 : f32 to vector<256x32xf32>
    %25 = arith.maximumf %23, %24 : vector<256x32xf32>
    %c0_25 = arith.constant 0 : index
    %c0_26 = arith.constant 0 : index
    %26 = vector.load %arg26[%c0_25, %c0_26] : memref<256x32xf32, #tpu.memory_space<vmem>>, vector<256x32xf32>
    tpu.vector_store %arg26[%c0_25, %c0_26], %25 {strides = array<i32>} : memref<256x32xf32, #tpu.memory_space<vmem>>, vector<256x32xf32>,
    %c0_27 = arith.constant 0 : index
    %c0_28 = arith.constant 0 : index
    %c0_29 = arith.constant 0 : index
    %27 = vector.load %arg14[%c0_27, %c0_28, %c0_29] : memref<1x1x32xf32, #tpu.memory_space<vmem>>, vector<1x1x32xf32>
    %28 = vector.shape_cast %27 : vector<1x1x32xf32> to vector<1x32xf32>
    %29 = vector.broadcast %28 : vector<1x32xf32> to vector<256x32xf32>
    %30 = arith.mulf %25, %29 : vector<256x32xf32>
    %cst_30 = arith.constant dense<0.000000e+00> : vector<256xf32>
    %31 = vector.multi_reduction <add>, %30, %cst_30 [1] : vector<256x32xf32> to vector<256xf32>
    %32 = vector.shape_cast %31 : vector<256xf32> to vector<256x1xf32>
    %cst_31 = arith.constant dense<0xFF800000> : vector<1xf32>
    %33 = vector.multi_reduction <maximumf>, %32, %cst_31 [0] : vector<256x1xf32> to vector<1xf32>
    %34 = vector.shape_cast %33 : vector<1xf32> to vector<1x1xf32>
    %35 = vector.broadcast %34 : vector<1x1xf32> to vector<256x1xf32>
    %36 = arith.subf %32, %35 : vector<256x1xf32>
    %37 = math.exp %36 : vector<256x1xf32>
    %c0_32 = arith.constant 0 : index
    %c0_33 = arith.constant 0 : index
    %c0_34 = arith.constant 0 : index
    %38 = vector.load %arg15[%c0_32, %c0_33, %c0_34] : memref<1x32x32xf32, #tpu.memory_space<vmem>>, vector<1x32x32xf32>
    %39 = vector.shape_cast %38 : vector<1x32x32xf32> to vector<32x32xf32>
    %cst_35 = arith.constant dense<0.000000e+00> : vector<256x32xf32>
    %40 = tpu.matmul %25, %39, %cst_35 {dimension_numbers = #tpu.dot_dimension_numbers<[1], [0], [0], [1], [0, 0, 1, 1], [], []>} : vector<256x32xf32>, vector<32x32xf32>, vector<256x32xf32> -> vector<256x32xf32>
    %41 = vector.shape_cast %37 : vector<256x1xf32> to vector<256x1xf32>
    %42 = vector.broadcast %41 : vector<256x1xf32> to vector<256x32xf32>
    %c0_36 = arith.constant 0 : index
    %c0_37 = arith.constant 0 : index
    %43 = vector.load %arg5[%c0_36, %c0_37] : memref<16x256xf32, #tpu.memory_space<vmem>>, vector<16x256xf32>
    %44 = arith.mulf %42, %40 : vector<256x32xf32>
    %cst_38 = arith.constant dense<0.000000e+00> : vector<16x32xf32>
    %45 = tpu.matmul %43, %44, %cst_38 {dimension_numbers = #tpu.dot_dimension_numbers<[1], [0], [0], [1], [0, 0, 1, 1], [], []>} : vector<16x256xf32>, vector<256x32xf32>, vector<16x32xf32> -> vector<16x32xf32>
    %cst_39 = arith.constant dense<0.000000e+00> : vector<16x32xf32>
    %46 = tpu.matmul %43, %42, %cst_39 {dimension_numbers = #tpu.dot_dimension_numbers<[1], [0], [0], [1], [0, 0, 1, 1], [], []>} : vector<16x256xf32>, vector<256x32xf32>, vector<16x32xf32> -> vector<16x32xf32>
    %47 = arith.divf %45, %46 : vector<16x32xf32>
    %c0_40 = arith.constant 0 : index
    %c0_41 = arith.constant 0 : index
    %c0_42 = arith.constant 0 : index
    %48 = vector.load %arg16[%c0_40, %c0_41, %c0_42] : memref<1x32x32xf32, #tpu.memory_space<vmem>>, vector<1x32x32xf32>
    %49 = vector.shape_cast %48 : vector<1x32x32xf32> to vector<32x32xf32>
    %cst_43 = arith.constant dense<0.000000e+00> : vector<16x32xf32>
    %50 = tpu.matmul %3, %49, %cst_43 {dimension_numbers = #tpu.dot_dimension_numbers<[1], [0], [0], [1], [0, 0, 1, 1], [], []>} : vector<16x32xf32>, vector<32x32xf32>, vector<16x32xf32> -> vector<16x32xf32>
    %c0_44 = arith.constant 0 : index
    %c0_45 = arith.constant 0 : index
    %c0_46 = arith.constant 0 : index
    %51 = vector.load %arg17[%c0_44, %c0_45, %c0_46] : memref<1x32x32xf32, #tpu.memory_space<vmem>>, vector<1x32x32xf32>
    %52 = vector.shape_cast %51 : vector<1x32x32xf32> to vector<32x32xf32>
    %cst_47 = arith.constant dense<0.000000e+00> : vector<16x32xf32>
    %53 = tpu.matmul %47, %52, %cst_47 {dimension_numbers = #tpu.dot_dimension_numbers<[1], [0], [0], [1], [0, 0, 1, 1], [], []>} : vector<16x32xf32>, vector<32x32xf32>, vector<16x32xf32> -> vector<16x32xf32>
    %54 = arith.addf %50, %53 : vector<16x32xf32>
    %c0_48 = arith.constant 0 : index
    %c0_49 = arith.constant 0 : index
    %c0_50 = arith.constant 0 : index
    %55 = vector.load %arg18[%c0_48, %c0_49, %c0_50] : memref<1x1x32xf32, #tpu.memory_space<vmem>>, vector<1x1x32xf32>
    %56 = vector.shape_cast %55 : vector<1x1x32xf32> to vector<1x32xf32>
    %57 = vector.broadcast %56 : vector<1x32xf32> to vector<16x32xf32>
    %58 = arith.addf %54, %57 : vector<16x32xf32>
    %cst_51 = arith.constant 0.000000e+00 : f32
    %59 = vector.broadcast %cst_51 : f32 to vector<16x32xf32>
    %60 = arith.maximumf %58, %59 : vector<16x32xf32>
    %c0_52 = arith.constant 0 : index
    %c0_53 = arith.constant 0 : index
    %61 = vector.load %arg25[%c0_52, %c0_53] : memref<16x32xf32, #tpu.memory_space<vmem>>, vector<16x32xf32>
    tpu.vector_store %arg25[%c0_52, %c0_53], %60 {strides = array<i32>} : memref<16x32xf32, #tpu.memory_space<vmem>>, vector<16x32xf32>,
    %c1_i32 = arith.constant 1 : i32
    %62 = arith.cmpi eq, %arg0, %c1_i32 : i32
    %63 = arith.extui %62 : i1 to i32
    %c0_i32_54 = arith.constant 0 : i32
    %64 = arith.cmpi ne, %63, %c0_i32_54 : i32
    scf.if %64 {
      %c0_55 = arith.constant 0 : index
      %c0_56 = arith.constant 0 : index
      %65 = vector.load %arg19[%c0_55, %c0_56] : memref<32x8xf32, #tpu.memory_space<vmem>>, vector<32x8xf32>
      %cst_57 = arith.constant dense<0.000000e+00> : vector<16x8xf32>
      %66 = tpu.matmul %60, %65, %cst_57 {dimension_numbers = #tpu.dot_dimension_numbers<[1], [0], [0], [1], [0, 0, 1, 1], [], []>} : vector<16x32xf32>, vector<32x8xf32>, vector<16x8xf32> -> vector<16x8xf32>
      %c0_58 = arith.constant 0 : index
      %c0_59 = arith.constant 0 : index
      %67 = vector.load %arg20[%c0_58, %c0_59] : memref<1x8xf32, #tpu.memory_space<vmem>>, vector<1x8xf32>
      %68 = vector.broadcast %67 : vector<1x8xf32> to vector<16x8xf32>
      %69 = arith.addf %66, %68 : vector<16x8xf32>
      %c0_60 = arith.constant 0 : index
      %c0_61 = arith.constant 0 : index
      %70 = vector.load %arg23[%c0_60, %c0_61] : memref<16x8xf32, #tpu.memory_space<vmem>>, vector<16x8xf32>
      tpu.vector_store %arg23[%c0_60, %c0_61], %69 {strides = array<i32>} : memref<16x8xf32, #tpu.memory_space<vmem>>, vector<16x8xf32>,
      %c0_62 = arith.constant 0 : index
      %c0_63 = arith.constant 0 : index
      %71 = vector.load %arg21[%c0_62, %c0_63] : memref<32x4xf32, #tpu.memory_space<vmem>>, vector<32x4xf32>
      %cst_64 = arith.constant dense<0.000000e+00> : vector<256x4xf32>
      %72 = tpu.matmul %25, %71, %cst_64 {dimension_numbers = #tpu.dot_dimension_numbers<[1], [0], [0], [1], [0, 0, 1, 1], [], []>} : vector<256x32xf32>, vector<32x4xf32>, vector<256x4xf32> -> vector<256x4xf32>
      %c0_65 = arith.constant 0 : index
      %c0_66 = arith.constant 0 : index
      %73 = vector.load %arg22[%c0_65, %c0_66] : memref<1x4xf32, #tpu.memory_space<vmem>>, vector<1x4xf32>
      %74 = vector.broadcast %73 : vector<1x4xf32> to vector<256x4xf32>
      %75 = arith.addf %72, %74 : vector<256x4xf32>
      %c0_67 = arith.constant 0 : index
      %c0_68 = arith.constant 0 : index
      %76 = vector.load %arg24[%c0_67, %c0_68] : memref<256x4xf32, #tpu.memory_space<vmem>>, vector<256x4xf32>
      tpu.vector_store %arg24[%c0_67, %c0_68], %75 {strides = array<i32>} : memref<256x4xf32, #tpu.memory_space<vmem>>, vector<256x4xf32>,
    } else {
    }
    return
  }
  func.func @transform_0(%arg0: i32) -> (i32, i32) {
    %c0_i32 = arith.constant 0 : i32
    %c0_i32_0 = arith.constant 0 : i32
    %c0_i32_1 = arith.constant 0 : i32
    return %c0_i32, %c0_i32_0 : i32, i32
  }
  func.func @transform_1(%arg0: i32) -> (i32, i32) {
    %c0_i32 = arith.constant 0 : i32
    %c0_i32_0 = arith.constant 0 : i32
    %c0_i32_1 = arith.constant 0 : i32
    return %c0_i32, %c0_i32_0 : i32, i32
  }
  func.func @transform_2(%arg0: i32) -> (i32, i32) {
    %c0_i32 = arith.constant 0 : i32
    %c0_i32_0 = arith.constant 0 : i32
    %c0_i32_1 = arith.constant 0 : i32
    return %c0_i32, %c0_i32_0 : i32, i32
  }
  func.func @transform_3(%arg0: i32) -> (i32, i32) {
    %c0_i32 = arith.constant 0 : i32
    %c0_i32_0 = arith.constant 0 : i32
    %c0_i32_1 = arith.constant 0 : i32
    return %c0_i32, %c0_i32_0 : i32, i32
  }
  func.func @transform_4(%arg0: i32) -> (i32, i32) {
    %c0_i32 = arith.constant 0 : i32
    %c0_i32_0 = arith.constant 0 : i32
    %c0_i32_1 = arith.constant 0 : i32
    return %c0_i32, %c0_i32_0 : i32, i32
  }
  func.func @transform_5(%arg0: i32) -> (i32, i32) {
    %c0_i32 = arith.constant 0 : i32
    %c0_i32_0 = arith.constant 0 : i32
    %c0_i32_1 = arith.constant 0 : i32
    return %c0_i32, %c0_i32_0 : i32, i32
  }
  func.func @transform_6(%arg0: i32) -> (i32, i32) {
    %c0_i32 = arith.constant 0 : i32
    %c0_i32_0 = arith.constant 0 : i32
    %c0_i32_1 = arith.constant 0 : i32
    return %c0_i32, %c0_i32_0 : i32, i32
  }
  func.func @transform_7(%arg0: i32) -> (i32, i32) {
    %c0_i32 = arith.constant 0 : i32
    %c0_i32_0 = arith.constant 0 : i32
    %c0_i32_1 = arith.constant 0 : i32
    return %c0_i32, %c0_i32_0 : i32, i32
  }
  func.func @transform_8(%arg0: i32) -> (i32, i32) {
    %c0_i32 = arith.constant 0 : i32
    %c0_i32_0 = arith.constant 0 : i32
    %c0_i32_1 = arith.constant 0 : i32
    return %c0_i32, %c0_i32_0 : i32, i32
  }
  func.func @transform_9(%arg0: i32) -> (i32, i32, i32) {
    %c0_i32 = arith.constant 0 : i32
    %c0_i32_0 = arith.constant 0 : i32
    %c0_i32_1 = arith.constant 0 : i32
    return %arg0, %c0_i32, %c0_i32_0 : i32, i32, i32
  }
  func.func @transform_10(%arg0: i32) -> (i32, i32, i32) {
    %c0_i32 = arith.constant 0 : i32
    %c0_i32_0 = arith.constant 0 : i32
    %c0_i32_1 = arith.constant 0 : i32
    return %arg0, %c0_i32, %c0_i32_0 : i32, i32, i32
  }
  func.func @transform_11(%arg0: i32) -> (i32, i32, i32) {
    %c0_i32 = arith.constant 0 : i32
    %c0_i32_0 = arith.constant 0 : i32
    %c0_i32_1 = arith.constant 0 : i32
    return %arg0, %c0_i32, %c0_i32_0 : i32, i32, i32
  }
  func.func @transform_12(%arg0: i32) -> (i32, i32, i32) {
    %c0_i32 = arith.constant 0 : i32
    %c0_i32_0 = arith.constant 0 : i32
    %c0_i32_1 = arith.constant 0 : i32
    return %arg0, %c0_i32, %c0_i32_0 : i32, i32, i32
  }
  func.func @transform_13(%arg0: i32) -> (i32, i32, i32) {
    %c0_i32 = arith.constant 0 : i32
    %c0_i32_0 = arith.constant 0 : i32
    %c0_i32_1 = arith.constant 0 : i32
    return %arg0, %c0_i32, %c0_i32_0 : i32, i32, i32
  }
  func.func @transform_14(%arg0: i32) -> (i32, i32, i32) {
    %c0_i32 = arith.constant 0 : i32
    %c0_i32_0 = arith.constant 0 : i32
    %c0_i32_1 = arith.constant 0 : i32
    return %arg0, %c0_i32, %c0_i32_0 : i32, i32, i32
  }
  func.func @transform_15(%arg0: i32) -> (i32, i32, i32) {
    %c0_i32 = arith.constant 0 : i32
    %c0_i32_0 = arith.constant 0 : i32
    %c0_i32_1 = arith.constant 0 : i32
    return %arg0, %c0_i32, %c0_i32_0 : i32, i32, i32
  }
  func.func @transform_16(%arg0: i32) -> (i32, i32, i32) {
    %c0_i32 = arith.constant 0 : i32
    %c0_i32_0 = arith.constant 0 : i32
    %c0_i32_1 = arith.constant 0 : i32
    return %arg0, %c0_i32, %c0_i32_0 : i32, i32, i32
  }
  func.func @transform_17(%arg0: i32) -> (i32, i32, i32) {
    %c0_i32 = arith.constant 0 : i32
    %c0_i32_0 = arith.constant 0 : i32
    %c0_i32_1 = arith.constant 0 : i32
    return %arg0, %c0_i32, %c0_i32_0 : i32, i32, i32
  }
  func.func @transform_18(%arg0: i32) -> (i32, i32) {
    %c0_i32 = arith.constant 0 : i32
    %c0_i32_0 = arith.constant 0 : i32
    %c0_i32_1 = arith.constant 0 : i32
    return %c0_i32, %c0_i32_0 : i32, i32
  }
  func.func @transform_19(%arg0: i32) -> (i32, i32) {
    %c0_i32 = arith.constant 0 : i32
    %c0_i32_0 = arith.constant 0 : i32
    %c0_i32_1 = arith.constant 0 : i32
    return %c0_i32, %c0_i32_0 : i32, i32
  }
  func.func @transform_20(%arg0: i32) -> (i32, i32) {
    %c0_i32 = arith.constant 0 : i32
    %c0_i32_0 = arith.constant 0 : i32
    %c0_i32_1 = arith.constant 0 : i32
    return %c0_i32, %c0_i32_0 : i32, i32
  }
  func.func @transform_21(%arg0: i32) -> (i32, i32) {
    %c0_i32 = arith.constant 0 : i32
    %c0_i32_0 = arith.constant 0 : i32
    %c0_i32_1 = arith.constant 0 : i32
    return %c0_i32, %c0_i32_0 : i32, i32
  }
  func.func @transform_22(%arg0: i32) -> (i32, i32) {
    %c0_i32 = arith.constant 0 : i32
    %c0_i32_0 = arith.constant 0 : i32
    %c0_i32_1 = arith.constant 0 : i32
    return %c0_i32, %c0_i32_0 : i32, i32
  }
  func.func @transform_23(%arg0: i32) -> (i32, i32) {
    %c0_i32 = arith.constant 0 : i32
    %c0_i32_0 = arith.constant 0 : i32
    %c0_i32_1 = arith.constant 0 : i32
    return %c0_i32, %c0_i32_0 : i32, i32
  }
}

</mosaic_0001>

<bundles_post_ra>
// kernel: stack_gnn_forward.1
= control target key start
LH: loop header
LB: loop body
LE: loop exit
PB: predicated region body
PF: predicated region fallthrough
CT: control target
= control target key end

     0   :  { %s7008_s0 = inlined_call_operand.vmem [shape: f32[16,8], index: 0, kind: input, shape index: {}]   ;;  %s7009_s1 = inlined_call_operand.vmem [shape: f32[256,4], index: 1, kind: input, shape index: {}]   ;;  %s7010_s2 = inlined_call_operand.vmem [shape: f32[256,16], index: 2, kind: input, shape index: {}]   ;;  %s7011_s3 = inlined_call_operand.vmem [shape: f32[256,16], index: 3, kind: input, shape index: {}]   ;;  %s7012_s4 = inlined_call_operand.vmem [shape: f32[16,256], index: 4, kind: input, shape index: {}]   ;;  %s7013_s5 = inlined_call_operand.vmem [shape: f32[8,32], index: 5, kind: input, shape index: {}]   ;;  %s7014_s6 = inlined_call_operand.vmem [shape: f32[1,32], index: 6, kind: input, shape index: {}]   ;;  %s7015_s7 = inlined_call_operand.vmem [shape: f32[4,32], index: 7, kind: input, shape index: {}]   ;;  %s7016_s8 = inlined_call_operand.vmem [shape: f32[1,32], index: 8, kind: input, shape index: {}]   ;;  %s7017_s9 = inlined_call_operand.vmem [shape: f32[2,32,32], index: 9, kind: input, shape index: {}]   ;;  %s7018_s10 = inlined_call_operand.vmem [shape: f32[2,32,32], index: 10, kind: input, shape index: {}]   ;;  %s7019_s11 = inlined_call_operand.vmem [shape: f32[2,32,32], index: 11, kind: input, shape index: {}]   ;;  %s7020_s12 = inlined_call_operand.vmem [shape: f32[2,1,32], index: 12, kind: input, shape index: {}]   ;;  %s7021_s13 = inlined_call_operand.vmem [shape: f32[2,1,32], index: 13, kind: input, shape index: {}]   ;;  %s7022_s14 = inlined_call_operand.vmem [shape: f32[2,32,32], index: 14, kind: input, shape index: {}]   ;;  %s7023_s15 = inlined_call_operand.vmem [shape: f32[2,32,32], index: 15, kind: input, shape index: {}]   ;;  %s7024_s16 = inlined_call_operand.vmem [shape: f32[2,32,32], index: 16, kind: input, shape index: {}]   ;;  %s7025_s17 = inlined_call_operand.vmem [shape: f32[2,1,32], index: 17, kind: input, shape index: {}]   ;;  %s7026_s18 = inlined_call_operand.vmem [shape: f32[32,8], index: 18, kind: input, shape index: {}]   ;;  %s7027_s19 = inlined_call_operand.vmem [shape: f32[1,8], index: 19, kind: input, shape index: {}]   ;;  %s7028_s20 = inlined_call_operand.vmem [shape: f32[32,4], index: 20, kind: input, shape index: {}]   ;;  %s7029_s21 = inlined_call_operand.vmem [shape: f32[1,4], index: 21, kind: input, shape index: {}]   ;;  %s7030_s22 = inlined_call_operand.vmem [shape: f32[16,8], index: 22, kind: output, shape index: {0}]   ;;  %s7031_s23 = inlined_call_operand.vmem [shape: f32[256,4], index: 23, kind: output, shape index: {1}]  }
   0x1   :  { %7074 = sst [smem:[#allocation42_spill]] %s7008_s0 }
   0x2   :  { %7075 = sst [smem:[#allocation43_spill]] %s7009_s1 }
   0x3   :  { %7076 = sst [smem:[#allocation44_spill]] %s7010_s2 }
   0x4   :  { %7077 = sst [smem:[#allocation45_spill]] %s7011_s3 }
   0x5   :  { %7078 = sst [smem:[#allocation46_spill]] %s7012_s4  ;;  %s5336_s4 = smov 0  }
   0x6   :  { %7079 = sst [smem:[#allocation47_spill]] %s7013_s5 }
   0x7   :  { %7080 = sst [smem:[#allocation48_spill]] %s7014_s6 }
   0x8   :  { %7081 = sst [smem:[#allocation49_spill]] %s7015_s7 }
   0x9   :  { %7082 = sst [smem:[#allocation50_spill]] %s7017_s9 }
   0xa   :  { %7083 = sst [smem:[#allocation51_spill]] %s7018_s10 }
   0xb   :  { %7084 = sst [smem:[#allocation52_spill]] %s7019_s11 }
   0xc   :  { %7085 = sst [smem:[#allocation53_spill]] %s7030_s22 }
   0xd   :  { %7086 = sst [smem:[#allocation54_spill]] %s7031_s23 }
   0xe LB: > { %7087 = sst [smem:[#allocation4_spill]] %s5214_s4  ;;  %s5342_s30 = sadd.s32 4294967295, %s5214_s4   ;;  %s5214_s4 = sphi %s5336_s4, %s34_s4  }
   0xf   : > { %p4185_p0 = scmp.ge.s32.totalorder %s5214_s4, 1  ;;  %p704_p1 = scmp.lt.s32.totalorder %s5214_s4, 3 }
  0x11   : > { %p705_p2 = pnand %p4185_p0, %p704_p1 }
  0x13   : > { %708 = sbr.rel (%p705_p2) target bundleno = 1702 (0x6a6), region = 108 }
  0x18   : > { %p797_p3 = scmp.lt.s32.totalorder %s5342_s30, 1  ;;  %s7088_s9 = sld [smem:[#allocation50_spill]] }
  0x19   : > { %s7089_s10 = sld [smem:[#allocation51_spill]]  ;;  %p4198_p4 = scmp.ne.s32.totalorder %s5342_s30, 0 }
  0x1a   : > { %s5348_s24 = scalar_select %p797_p3, %s5342_s30, 1 }
  0x1b   : > { %s7090_s11 = sld [smem:[#allocation52_spill]] }
  0x1c   : > { %s4414_s25 = sshll.u32 %s5348_s24, 5  ;;  %s835_s22 = scalar_lea.vmem %s7025_s17, %s5348_s24 }
  0x1d   : > { %s5377_s2 = scalar_lea.vmem %s7022_s14, %s4414_s25  ;;  %s5382_s7 = scalar_lea.vmem %s7023_s15, %s4414_s25 }
  0x1e   : > { %s5358_s27 = scalar_lea.vmem %s7088_s9, %s4414_s25  ;;  %s5387_s3 = scalar_lea.vmem %s7024_s16, %s4414_s25 }
  0x1f   : > { %s5363_s29 = scalar_lea.vmem %s7089_s10, %s4414_s25  ;;  %839 = sbr.rel (%p4198_p4) target bundleno = 274 (0x112), region = 112 }
  0x20   : > { %s7091_s1 = sld [smem:[#allocation49_spill]] (!%p4198_p4) }
  0x21   : > { %s5368_s4 = scalar_lea.vmem %s7090_s11, %s4414_s25  ;;  %s7092_s5 = sld [smem:[#allocation43_spill]] (!%p4198_p4) }
  0x22   : > { %s7093_s28 = sld [smem:[#allocation47_spill]] (!%p4198_p4) }
  0x23   : > { %s7095_s25 = sld [smem:[#allocation48_spill]] (!%p4198_p4) }
  0x24   : > { %vm1074_vm0 = vcmask 1043456   ;;  %vm977_vm1 = vcmask 31744   ;;  %vm850_vm2 = vcmask 64512   ;;  %v5541_v36 = vld [vmem:[%s7016_s8] ss:$0 sm:$0xff]  ;;  %vm934_vm3 = vcmask 261120  }
  0x26   : > { %v969_v0 = vld [vmem:[%s7091_s1] sm:$0xf]  ;;  %s7094_s1 = sld [smem:[#allocation42_spill]] }
  0x27   : > { %v951_v1 = vld [vmem:[%s7092_s5 + $0x70] sm:$0xff]  ;;  %5120 = vmatprep.subr.msk.mxu1 %vm1074_vm0, %v969_v0  ;;  %v952_v3 = vld [vmem:[%s7092_s5 + $0x78] sm:$0xff]  ;;  %v953_v6 = vld [vmem:[%s7092_s5 + $0x80] sm:$0xff] }
  0x28   : > { %v842_v2 = vld [vmem:[%s7093_s28] sm:$0xff]  ;;  %4766 = vmatprep.mubr.msk.f32.mxu1 %vm977_vm1, %v951_v1  ;;  %5121 = vmatpush3.msk.msra.mxu1 %vm1074_vm0, %v969_v0  ;;  %v954_v8 = vld [vmem:[%s7092_s5 + $0x88] sm:$0xff]  ;;  %v955_v9 = vld [vmem:[%s7092_s5 + $0x90] sm:$0xff] }
  0x29   : > { %4738 = vmatprep.subr.mxu0 %v842_v2  ;;  %4767 = vmatmul.mubr.msk.f32.vlgmr.msra.gmra.mxu1 %vm977_vm1, %v952_v3  ;;  %v937_v7 = vld [vmem:[%s7092_s5] sm:$0xff]  ;;  %v938_v10 = vld [vmem:[%s7092_s5 + $0x8] sm:$0xff]  ;;  %v939_v11 = vld [vmem:[%s7092_s5 + $0x10] sm:$0xff] }
  0x2a   : > { %4739 = vmatpush3.msra.mxu0 %v842_v2  ;;  %4769 = vmatprep.mubr.msk.f32.mxu1 %vm977_vm1, %v953_v6  ;;  %v956_v12 = vld [vmem:[%s7092_s5 + $0x98] sm:$0xff]  ;;  %v957_v13 = vld [vmem:[%s7092_s5 + $0xa0] sm:$0xff]  ;;  %v958_v16 = vld [vmem:[%s7092_s5 + $0xa8] sm:$0xff] }
  0x2b   : > { %4743 = vmatprep.subr.msk.mxu0 %vm1074_vm0, %v969_v0  ;;  %v940_v14 = vld [vmem:[%s7092_s5 + $0x18] sm:$0xff]  ;;  %v941_v15 = vld [vmem:[%s7092_s5 + $0x20] sm:$0xff]  ;;  %v959_v17 = vld [vmem:[%s7092_s5 + $0xb0] sm:$0xff] }
  0x2c   : > { %v840_v4 = vld [vmem:[%s7094_s1] sm:$0xff]  ;;  %v841_v5 = vld [vmem:[%s7094_s1 + $0x8] sm:$0xff]  ;;  %v943_v19 = vld [vmem:[%s7092_s5 + $0x30] sm:$0xff] }
  0x2d   : > { %4740 = vmatprep.mubr.msk.f32.mxu0 %vm850_vm2, %v840_v4  ;;  %4770 = vmatmul.mubr.msk.f32.gmra.mxu1 %vm977_vm1, %v954_v8  ;;  %v942_v18 = vld [vmem:[%s7092_s5 + $0x28] sm:$0xff]  ;;  %v960_v20 = vld [vmem:[%s7092_s5 + $0xb8] sm:$0xff]  ;;  %v961_v21 = vld [vmem:[%s7092_s5 + $0xc0] sm:$0xff] }
  0x2e   : > { %4741 = vmatmul.mubr.msk.f32.vlgmr.msra.gmra.mxu0 %vm850_vm2, %v841_v5  ;;  %4772 = vmatprep.mubr.msk.f32.mxu1 %vm977_vm1, %v955_v9  ;;  %v944_v22 = vld [vmem:[%s7092_s5 + $0x38] sm:$0xff]  ;;  %v945_v23 = vld [vmem:[%s7092_s5 + $0x40] sm:$0xff]  ;;  %v962_v24 = vld [vmem:[%s7092_s5 + $0xc8] sm:$0xff] }
  0x2f   : > { %4744 = vmatpush3.msk.msra.mxu0 %vm1074_vm0, %v969_v0  ;;  %4745 = vmatprep.mubr.msk.f32.mxu0 %vm977_vm1, %v937_v7  ;;  %v963_v25 = vld [vmem:[%s7092_s5 + $0xd0] sm:$0xff]  ;;  %v946_v26 = vld [vmem:[%s7092_s5 + $0x48] sm:$0xff]  ;;  %v964_v28 = vld [vmem:[%s7092_s5 + $0xd8] sm:$0xff] }
  0x30   : > { %v947_v27 = vld [vmem:[%s7092_s5 + $0x50] sm:$0xff]  ;;  %v965_v29 = vld [vmem:[%s7092_s5 + $0xe0] sm:$0xff]  ;;  %v948_v30 = vld [vmem:[%s7092_s5 + $0x58] sm:$0xff] }
  0x31   : > { %4773 = vmatmul.mubr.msk.f32.gmra.mxu1 %vm977_vm1, %v956_v12  ;;  %v949_v31 = vld [vmem:[%s7092_s5 + $0x60] sm:$0xff]  ;;  %v966_v32 = vld [vmem:[%s7092_s5 + $0xe8] sm:$0xff]  ;;  %v967_v33 = vld [vmem:[%s7092_s5 + $0xf0] sm:$0xff] }
  0x32   : > { %4746 = vmatmul.mubr.msk.f32.vlgmr.msra.gmra.mxu0 %vm977_vm1, %v938_v10  ;;  %4775 = vmatprep.mubr.msk.f32.mxu1 %vm977_vm1, %v957_v13  ;;  %v950_v34 = vld [vmem:[%s7092_s5 + $0x68] sm:$0xff]  ;;  %v968_v35 = vld [vmem:[%s7092_s5 + $0xf8] sm:$0xff]  ;;  %v4199_v38 = vld [vmem:[%s7095_s25] ss:$0 sm:$0xff] }
  0x33   : > { %4748 = vmatprep.mubr.msk.f32.mxu0 %vm977_vm1, %v939_v11 }
  0x35   : > { %4776 = vmatmul.mubr.msk.f32.gmra.mxu1 %vm977_vm1, %v958_v16 }
  0x36   : > { %4749 = vmatmul.mubr.msk.f32.gmra.mxu0 %vm977_vm1, %v940_v14  ;;  %4778 = vmatprep.mubr.msk.f32.mxu1 %vm977_vm1, %v959_v17 }
  0x37   : > { %4751 = vmatprep.mubr.msk.f32.mxu0 %vm977_vm1, %v941_v15 }
  0x39   : > { %4779 = vmatmul.mubr.msk.f32.gmra.mxu1 %vm977_vm1, %v960_v20 }
  0x3a   : > { %4752 = vmatmul.mubr.msk.f32.gmra.mxu0 %vm977_vm1, %v942_v18  ;;  %4781 = vmatprep.mubr.msk.f32.mxu1 %vm977_vm1, %v961_v21 }
  0x3b   : > { %4754 = vmatprep.mubr.msk.f32.mxu0 %vm977_vm1, %v943_v19 }
  0x3d   : > { %4782 = vmatmul.mubr.msk.f32.gmra.mxu1 %vm977_vm1, %v962_v24 }
  0x3e   : > { %4755 = vmatmul.mubr.msk.f32.gmra.mxu0 %vm977_vm1, %v944_v22  ;;  %4784 = vmatprep.mubr.msk.f32.mxu1 %vm977_vm1, %v963_v25 }
  0x3f   : > { %4757 = vmatprep.mubr.msk.f32.mxu0 %vm977_vm1, %v945_v23 }
  0x41   : > { %4785 = vmatmul.mubr.msk.f32.gmra.mxu1 %vm977_vm1, %v964_v28 }
  0x42   : > { %4758 = vmatmul.mubr.msk.f32.gmra.mxu0 %vm977_vm1, %v946_v26  ;;  %4787 = vmatprep.mubr.msk.f32.mxu1 %vm977_vm1, %v965_v29 }
  0x43   : > { %4760 = vmatprep.mubr.msk.f32.mxu0 %vm977_vm1, %v947_v27 }
  0x45   : > { %4788 = vmatmul.mubr.msk.f32.gmra.mxu1 %vm977_vm1, %v966_v32 }
  0x46   : > { %4761 = vmatmul.mubr.msk.f32.gmra.mxu0 %vm977_vm1, %v948_v30  ;;  %4790 = vmatprep.mubr.msk.f32.mxu1 %vm977_vm1, %v967_v33 }
  0x47   : > { %4763 = vmatprep.mubr.msk.f32.mxu0 %vm977_vm1, %v949_v31 }
  0x49   : > { %4791 = vmatmul.mubr.msk.f32.gmra.mxu1 %vm977_vm1, %v968_v35 }
  0x4a   : > { %4764 = vmatmul.mubr.msk.f32.gmra.mxu0 %vm977_vm1, %v950_v34 }
  0xe9   : > { %v4768_v37 = vpop.f32.mrf.mxu1 }
  0xea   : > { %v1220_v39 = vadd.f32 %v4768_v37, %v5541_v36 }
  0xeb   : > { %v1214_v41 = vpop.f32.mrf.mxu1 }
  0xec   : > { %v1318_v42 = vmax.f32 %v1220_v39, 0.0  ;;  %v1215_v44 = vadd.f32 %v5541_v36, %v1214_v41 }
  0xed   : > { %v4771_v46 = vpop.f32.mrf.mxu1 }
  0xee   : > { %v4742_v40 = vpop.f32.mrf.mxu0  ;;  %1350 = vst.msk [vmem:[#allocation3 + $0x78] sm:$0xff] %vm934_vm3, %v1318_v42  ;;  %v1317_v48 = vmax.f32 %v1215_v44, 0.0  ;;  %v1230_v50 = vadd.f32 %v4771_v46, %v5541_v36 }
  0xef   : > { %v929_v43 = vadd.f32 %v4742_v40, %v4199_v38  ;;  %v1224_v52 = vpop.f32.mrf.mxu1 }
  0xf0   : > { %v923_v45 = vpop.f32.mrf.mxu0  ;;  %1349 = vst.msk [vmem:[#allocation3 + $0x70] sm:$0xff] %vm934_vm3, %v1317_v48  ;;  %v1320_v54 = vmax.f32 %v1230_v50, 0.0  ;;  %v1225_v56 = vadd.f32 %v5541_v36, %v1224_v52 }
  0xf1   : > { %v933_v47 = vmax.f32 %v929_v43, 0.0  ;;  %v924_v49 = vadd.f32 %v4199_v38, %v923_v45  ;;  %v4774_v58 = vpop.f32.mrf.mxu1 }
  0xf2   : > { %v4747_v51 = vpop.f32.mrf.mxu0  ;;  %1352 = vst.msk [vmem:[#allocation3 + $0x88] sm:$0xff] %vm934_vm3, %v1320_v54  ;;  %v1319_v60 = vmax.f32 %v1225_v56, 0.0  ;;  %v1240_v62 = vadd.f32 %v4774_v58, %v5541_v36 }
  0xf3   : > { %936 = vst.msk [vmem:[#allocation2 + $0x8] sm:$0xff] %vm934_vm3, %v933_v47  ;;  %v932_v53 = vmax.f32 %v924_v49, 0.0  ;;  %v1150_v55 = vadd.f32 %v4747_v51, %v5541_v36  ;;  %v1234_v0 = vpop.f32.mrf.mxu1 }
  0xf4   : > { %v1144_v57 = vpop.f32.mrf.mxu0  ;;  %1351 = vst.msk [vmem:[#allocation3 + $0x80] sm:$0xff] %vm934_vm3, %v1319_v60  ;;  %v1322_v2 = vmax.f32 %v1240_v62, 0.0  ;;  %v1235_v4 = vadd.f32 %v5541_v36, %v1234_v0 }
  0xf5   : > { %935 = vst.msk [vmem:[#allocation2] sm:$0xff] %vm934_vm3, %v932_v53  ;;  %v1304_v59 = vmax.f32 %v1150_v55, 0.0  ;;  %v1145_v61 = vadd.f32 %v5541_v36, %v1144_v57  ;;  %v4777_v6 = vpop.f32.mrf.mxu1 }
  0xf6   : > { %v4750_v63 = vpop.f32.mrf.mxu0  ;;  %1354 = vst.msk [vmem:[#allocation3 + $0x98] sm:$0xff] %vm934_vm3, %v1322_v2  ;;  %v1321_v8 = vmax.f32 %v1235_v4, 0.0  ;;  %v1250_v10 = vadd.f32 %v4777_v6, %v5541_v36 }
  0xf7   : > { %1336 = vst.msk [vmem:[#allocation3 + $0x8] sm:$0xff] %vm934_vm3, %v1304_v59  ;;  %v1303_v1 = vmax.f32 %v1145_v61, 0.0  ;;  %v1160_v3 = vadd.f32 %v4750_v63, %v5541_v36  ;;  %v1244_v12 = vpop.f32.mrf.mxu1 }
  0xf8   : > { %v1154_v5 = vpop.f32.mrf.mxu0  ;;  %1353 = vst.msk [vmem:[#allocation3 + $0x90] sm:$0xff] %vm934_vm3, %v1321_v8  ;;  %v1324_v14 = vmax.f32 %v1250_v10, 0.0  ;;  %v1245_v16 = vadd.f32 %v5541_v36, %v1244_v12 }
  0xf9   : > { %1335 = vst.msk [vmem:[#allocation3] sm:$0xff] %vm934_vm3, %v1303_v1  ;;  %v1306_v7 = vmax.f32 %v1160_v3, 0.0  ;;  %v1155_v9 = vadd.f32 %v5541_v36, %v1154_v5  ;;  %v4780_v18 = vpop.f32.mrf.mxu1 }
  0xfa   : > { %v4753_v11 = vpop.f32.mrf.mxu0  ;;  %1356 = vst.msk [vmem:[#allocation3 + $0xa8] sm:$0xff] %vm934_vm3, %v1324_v14  ;;  %v1323_v20 = vmax.f32 %v1245_v16, 0.0  ;;  %v1260_v22 = vadd.f32 %v4780_v18, %v5541_v36 }
  0xfb   : > { %1338 = vst.msk [vmem:[#allocation3 + $0x18] sm:$0xff] %vm934_vm3, %v1306_v7  ;;  %v1305_v13 = vmax.f32 %v1155_v9, 0.0  ;;  %v1170_v15 = vadd.f32 %v4753_v11, %v5541_v36  ;;  %v1254_v24 = vpop.f32.mrf.mxu1 }
  0xfc   : > { %v1164_v17 = vpop.f32.mrf.mxu0  ;;  %1355 = vst.msk [vmem:[#allocation3 + $0xa0] sm:$0xff] %vm934_vm3, %v1323_v20  ;;  %v1326_v26 = vmax.f32 %v1260_v22, 0.0  ;;  %v1255_v28 = vadd.f32 %v5541_v36, %v1254_v24 }
  0xfd   : > { %1337 = vst.msk [vmem:[#allocation3 + $0x10] sm:$0xff] %vm934_vm3, %v1305_v13  ;;  %v1308_v19 = vmax.f32 %v1170_v15, 0.0  ;;  %v1165_v21 = vadd.f32 %v5541_v36, %v1164_v17  ;;  %v4783_v30 = vpop.f32.mrf.mxu1 }
  0xfe   : > { %v4756_v23 = vpop.f32.mrf.mxu0  ;;  %1358 = vst.msk [vmem:[#allocation3 + $0xb8] sm:$0xff] %vm934_vm3, %v1326_v26  ;;  %v1325_v32 = vmax.f32 %v1255_v28, 0.0  ;;  %v1270_v34 = vadd.f32 %v4783_v30, %v5541_v36 }
  0xff   : > { %1340 = vst.msk [vmem:[#allocation3 + $0x28] sm:$0xff] %vm934_vm3, %v1308_v19  ;;  %v1307_v25 = vmax.f32 %v1165_v21, 0.0  ;;  %v1180_v27 = vadd.f32 %v4756_v23, %v5541_v36  ;;  %v1264_v37 = vpop.f32.mrf.mxu1 }
 0x100   : > { %v1174_v29 = vpop.f32.mrf.mxu0  ;;  %1357 = vst.msk [vmem:[#allocation3 + $0xb0] sm:$0xff] %vm934_vm3, %v1325_v32  ;;  %v1328_v39 = vmax.f32 %v1270_v34, 0.0  ;;  %v1265_v41 = vadd.f32 %v5541_v36, %v1264_v37 }
 0x101   : > { %1339 = vst.msk [vmem:[#allocation3 + $0x20] sm:$0xff] %vm934_vm3, %v1307_v25  ;;  %v1310_v31 = vmax.f32 %v1180_v27, 0.0  ;;  %v1175_v33 = vadd.f32 %v5541_v36, %v1174_v29  ;;  %v4786_v43 = vpop.f32.mrf.mxu1 }
 0x102   : > { %v4759_v35 = vpop.f32.mrf.mxu0  ;;  %1360 = vst.msk [vmem:[#allocation3 + $0xc8] sm:$0xff] %vm934_vm3, %v1328_v39  ;;  %v1327_v45 = vmax.f32 %v1265_v41, 0.0  ;;  %v1280_v47 = vadd.f32 %v4786_v43, %v5541_v36 }
 0x103   : > { %1342 = vst.msk [vmem:[#allocation3 + $0x38] sm:$0xff] %vm934_vm3, %v1310_v31  ;;  %v1309_v38 = vmax.f32 %v1175_v33, 0.0  ;;  %v1190_v40 = vadd.f32 %v4759_v35, %v5541_v36  ;;  %v1274_v49 = vpop.f32.mrf.mxu1 }
 0x104   : > { %v1184_v42 = vpop.f32.mrf.mxu0  ;;  %1359 = vst.msk [vmem:[#allocation3 + $0xc0] sm:$0xff] %vm934_vm3, %v1327_v45  ;;  %v1330_v51 = vmax.f32 %v1280_v47, 0.0  ;;  %v1275_v53 = vadd.f32 %v5541_v36, %v1274_v49 }
 0x105   : > { %1341 = vst.msk [vmem:[#allocation3 + $0x30] sm:$0xff] %vm934_vm3, %v1309_v38  ;;  %v1312_v44 = vmax.f32 %v1190_v40, 0.0  ;;  %v1185_v46 = vadd.f32 %v5541_v36, %v1184_v42  ;;  %v4789_v55 = vpop.f32.mrf.mxu1 }
 0x106   : > { %v4762_v48 = vpop.f32.mrf.mxu0  ;;  %1362 = vst.msk [vmem:[#allocation3 + $0xd8] sm:$0xff] %vm934_vm3, %v1330_v51  ;;  %v1329_v57 = vmax.f32 %v1275_v53, 0.0  ;;  %v1290_v59 = vadd.f32 %v4789_v55, %v5541_v36 }
 0x107   : > { %1344 = vst.msk [vmem:[#allocation3 + $0x48] sm:$0xff] %vm934_vm3, %v1312_v44  ;;  %v1311_v50 = vmax.f32 %v1185_v46, 0.0  ;;  %v1200_v52 = vadd.f32 %v4762_v48, %v5541_v36  ;;  %v1284_v61 = vpop.f32.mrf.mxu1 }
 0x108   : > { %v1194_v54 = vpop.f32.mrf.mxu0  ;;  %1361 = vst.msk [vmem:[#allocation3 + $0xd0] sm:$0xff] %vm934_vm3, %v1329_v57  ;;  %v1332_v63 = vmax.f32 %v1290_v59, 0.0  ;;  %v1285_v1 = vadd.f32 %v5541_v36, %v1284_v61 }
 0x109   : > { %1343 = vst.msk [vmem:[#allocation3 + $0x40] sm:$0xff] %vm934_vm3, %v1311_v50  ;;  %v1314_v56 = vmax.f32 %v1200_v52, 0.0  ;;  %v1195_v58 = vadd.f32 %v5541_v36, %v1194_v54  ;;  %v4792_v3 = vpop.f32.mrf.mxu1 }
 0x10a   : > { %v4765_v60 = vpop.f32.mrf.mxu0  ;;  %1364 = vst.msk [vmem:[#allocation3 + $0xe8] sm:$0xff] %vm934_vm3, %v1332_v63  ;;  %v1331_v5 = vmax.f32 %v1285_v1, 0.0  ;;  %v1300_v7 = vadd.f32 %v4792_v3, %v5541_v36 }
 0x10b   : > { %1346 = vst.msk [vmem:[#allocation3 + $0x58] sm:$0xff] %vm934_vm3, %v1314_v56  ;;  %v1313_v62 = vmax.f32 %v1195_v58, 0.0  ;;  %v1210_v0 = vadd.f32 %v4765_v60, %v5541_v36  ;;  %v1294_v8 = vpop.f32.mrf.mxu1 }
 0x10c   : > { %v1204_v2 = vpop.f32.mrf.mxu0  ;;  %1363 = vst.msk [vmem:[#allocation3 + $0xe0] sm:$0xff] %vm934_vm3, %v1331_v5  ;;  %v1334_v10 = vmax.f32 %v1300_v7, 0.0  ;;  %v1295_v11 = vadd.f32 %v5541_v36, %v1294_v8 }
 0x10d   : > { %1345 = vst.msk [vmem:[#allocation3 + $0x50] sm:$0xff] %vm934_vm3, %v1313_v62  ;;  %v1316_v4 = vmax.f32 %v1210_v0, 0.0  ;;  %v1205_v6 = vadd.f32 %v5541_v36, %v1204_v2 }
 0x10e   : > { %1366 = vst.msk [vmem:[#allocation3 + $0xf8] sm:$0xff] %vm934_vm3, %v1334_v10  ;;  %v1333_v12 = vmax.f32 %v1295_v11, 0.0 }
 0x10f   : > { %1348 = vst.msk [vmem:[#allocation3 + $0x68] sm:$0xff] %vm934_vm3, %v1316_v4  ;;  %v1315_v9 = vmax.f32 %v1205_v6, 0.0 }
 0x110   : > { %1365 = vst.msk [vmem:[#allocation3 + $0xf0] sm:$0xff] %vm934_vm3, %v1333_v12 }
 0x111   : > { %1347 = vst.msk [vmem:[#allocation3 + $0x60] sm:$0xff] %vm934_vm3, %v1315_v9 }
 0x112 PF: > { %v1404_v13 = vld [vmem:[%s5358_s27 + $0x18] sm:$0xff]  ;;  %v1403_v14 = vld [vmem:[%s5358_s27 + $0x10] sm:$0xff]  ;;  %vm1405_vm4 = vcmask 261120   ;;  %v1367_v36 = vld [vmem:[#allocation2] sm:$0xff]  ;;  %s7096_s28 = sld [smem:[#allocation44_spill]]  ;;  %vm1602_vm5 = vcmask 130048   ;;  %s7098_s0 = scalar_lea.vmem %s7020_s12, %s5348_s24 }
 0x113   : > { %4793 = vmatprep.subr.mxu0 %v1404_v13  ;;  %v1402_v15 = vld [vmem:[%s5358_s27 + $0x8] sm:$0xff]  ;;  %4801 = vmatprep.mubr.msk.f32.mxu0 %vm1405_vm4, %v1367_v36  ;;  %v1490_v16 = vld [vmem:[%s5363_s29 + $0x18] sm:$0xff]  ;;  %v1489_v17 = vld [vmem:[%s5363_s29 + $0x10] sm:$0xff]  ;;  %s7099_s9 = scalar_lea.vmem %s7021_s13, %s5348_s24  ;;  %s7132_s25 = sld [smem:[#allocation46_spill]] }
 0x114   : > { %4794 = vmatpush3.msra.mxu0 %v1404_v13  ;;  %4804 = vmatprep.subr.mxu1 %v1490_v16  ;;  %v1401_v18 = vld [vmem:[%s5358_s27] sm:$0xff]  ;;  %v1488_v19 = vld [vmem:[%s5363_s29 + $0x8] sm:$0xff]  ;;  %v1569_v22 = vld [vmem:[%s5368_s4 + $0x18] sm:$0xff]  ;;  %s7097_s27 = sld [smem:[#allocation45_spill]]  ;;  %p4375_p5 = scmp.ne.s32.totalorder %s5342_s30, 1 }
 0x115   : > { %4795 = vmatprep.subr.mxu0 %v1403_v14  ;;  %4805 = vmatpush3.msra.mxu1 %v1490_v16  ;;  %v1368_v20 = vld [vmem:[#allocation2 + $0x8] sm:$0xff]  ;;  %v1487_v21 = vld [vmem:[%s5363_s29] sm:$0xff]  ;;  %v1568_v23 = vld [vmem:[%s5368_s4 + $0x10] sm:$0xff]  ;;  %s7175_s29 = sld [smem:[#allocation53_spill]] (!%p4375_p5) }
 0x116   : > { %4796 = vmatpush3.msra.mxu0 %v1403_v14  ;;  %4806 = vmatprep.subr.mxu1 %v1489_v17  ;;  %v1567_v24 = vld [vmem:[%s5368_s4 + $0x8] sm:$0xff]  ;;  %v1566_v25 = vld [vmem:[%s5368_s4] sm:$0xff]  ;;  %v1369_v27 = vld [vmem:[#allocation3] sm:$0xff]  ;;  %s7176_s11 = sld [smem:[#allocation54_spill]] (!%p4375_p5) }
 0x117   : > { %4797 = vmatprep.subr.mxu0 %v1402_v15  ;;  %4807 = vmatpush3.msra.mxu1 %v1489_v17  ;;  %v1370_v28 = vld [vmem:[#allocation3 + $0x8] sm:$0xff]  ;;  %v1371_v29 = vld [vmem:[#allocation3 + $0x10] sm:$0xff]  ;;  %v1372_v30 = vld [vmem:[#allocation3 + $0x18] sm:$0xff] }
 0x118   : > { %4798 = vmatpush3.msra.mxu0 %v1402_v15  ;;  %4808 = vmatprep.subr.mxu1 %v1488_v19  ;;  %v1570_v26 = vld [vmem:[%s7096_s28] sm:$0xff]  ;;  %v1373_v31 = vld [vmem:[#allocation3 + $0x20] sm:$0xff]  ;;  %v1374_v32 = vld [vmem:[#allocation3 + $0x28] sm:$0xff] }
 0x119   : > { %4799 = vmatprep.subr.mxu0 %v1401_v18  ;;  %4809 = vmatpush3.msra.mxu1 %v1488_v19  ;;  %v1375_v33 = vld [vmem:[#allocation3 + $0x30] sm:$0xff]  ;;  %v1376_v34 = vld [vmem:[#allocation3 + $0x38] sm:$0xff]  ;;  %v1377_v35 = vld [vmem:[#allocation3 + $0x40] sm:$0xff] }
 0x11a   : > { %4800 = vmatpush3.msra.mxu0 %v1401_v18  ;;  %4810 = vmatprep.subr.mxu1 %v1487_v21  ;;  %v1378_v37 = vld [vmem:[#allocation3 + $0x48] sm:$0xff]  ;;  %v1379_v38 = vld [vmem:[#allocation3 + $0x50] sm:$0xff]  ;;  %v1380_v39 = vld [vmem:[#allocation3 + $0x58] sm:$0xff] }
 0x11b   : > { %4802 = vmatmul.mubr.msk.f32.vlgmr.msra.gmra.mxu0 %vm1405_vm4, %v1368_v20  ;;  %4811 = vmatpush3.msra.mxu1 %v1487_v21  ;;  %v1381_v40 = vld [vmem:[#allocation3 + $0x60] sm:$0xff]  ;;  %v1382_v41 = vld [vmem:[#allocation3 + $0x68] sm:$0xff]  ;;  %v1383_v42 = vld [vmem:[#allocation3 + $0x70] sm:$0xff] }
 0x11c   : > { %4812 = vmatprep.mubr.msk.f32.mxu1 %vm1405_vm4, %v1367_v36  ;;  %4867 = vmatprep.subr.mxu1 %v1569_v22  ;;  %v1384_v43 = vld [vmem:[#allocation3 + $0x78] sm:$0xff]  ;;  %v1385_v44 = vld [vmem:[#allocation3 + $0x80] sm:$0xff]  ;;  %v1386_v45 = vld [vmem:[#allocation3 + $0x88] sm:$0xff] }
 0x11d   : > { %4813 = vmatmul.mubr.msk.f32.vlgmr.msra.gmra.mxu1 %vm1405_vm4, %v1368_v20  ;;  %4819 = vmatprep.mubr.msk.f32.mxu0 %vm1602_vm5, %v1570_v26  ;;  %v1387_v46 = vld [vmem:[#allocation3 + $0x90] sm:$0xff]  ;;  %v1388_v47 = vld [vmem:[#allocation3 + $0x98] sm:$0xff]  ;;  %v1389_v48 = vld [vmem:[#allocation3 + $0xa0] sm:$0xff] }
 0x11e   : > { %4868 = vmatpush3.msra.mxu1 %v1569_v22  ;;  %4875 = vmatprep.mubr.msk.f32.mxu1 %vm1405_vm4, %v1369_v27  ;;  %v1390_v49 = vld [vmem:[#allocation3 + $0xa8] sm:$0xff]  ;;  %v1391_v50 = vld [vmem:[#allocation3 + $0xb0] sm:$0xff]  ;;  %v1392_v51 = vld [vmem:[#allocation3 + $0xb8] sm:$0xff] }
 0x11f   : > { %4869 = vmatprep.subr.mxu1 %v1568_v23  ;;  %v1393_v52 = vld [vmem:[#allocation3 + $0xc0] sm:$0xff]  ;;  %v1394_v53 = vld [vmem:[#allocation3 + $0xc8] sm:$0xff]  ;;  %v1395_v54 = vld [vmem:[#allocation3 + $0xd0] sm:$0xff] }
 0x120   : > { %4870 = vmatpush3.msra.mxu1 %v1568_v23  ;;  %v1396_v55 = vld [vmem:[#allocation3 + $0xd8] sm:$0xff]  ;;  %v1397_v56 = vld [vmem:[#allocation3 + $0xe0] sm:$0xff]  ;;  %v1398_v57 = vld [vmem:[#allocation3 + $0xe8] sm:$0xff] }
 0x121   : > { %4871 = vmatprep.subr.mxu1 %v1567_v24  ;;  %v1399_v58 = vld [vmem:[#allocation3 + $0xf0] sm:$0xff]  ;;  %v1400_v59 = vld [vmem:[#allocation3 + $0xf8] sm:$0xff]  ;;  %v1572_v0 = vld [vmem:[%s7096_s28 + $0x10] sm:$0xff] }
 0x122   : > { %4872 = vmatpush3.msra.mxu1 %v1567_v24  ;;  %v1571_v62 = vld [vmem:[%s7096_s28 + $0x8] sm:$0xff]  ;;  %v1573_v2 = vld [vmem:[%s7096_s28 + $0x18] sm:$0xff]  ;;  %v1574_v3 = vld [vmem:[%s7096_s28 + $0x20] sm:$0xff] }
 0x123   : > { %4873 = vmatprep.subr.mxu1 %v1566_v25  ;;  %v1575_v4 = vld [vmem:[%s7096_s28 + $0x28] sm:$0xff]  ;;  %v1576_v5 = vld [vmem:[%s7096_s28 + $0x30] sm:$0xff]  ;;  %v1577_v6 = vld [vmem:[%s7096_s28 + $0x38] sm:$0xff] }
 0x124   : > { %4874 = vmatpush3.msra.mxu1 %v1566_v25  ;;  %v1578_v7 = vld [vmem:[%s7096_s28 + $0x40] sm:$0xff]  ;;  %v1579_v8 = vld [vmem:[%s7096_s28 + $0x48] sm:$0xff]  ;;  %v1580_v9 = vld [vmem:[%s7096_s28 + $0x50] sm:$0xff] }
 0x125   : > { %4876 = vmatmul.mubr.msk.f32.vlgmr.msra.gmra.mxu1 %vm1405_vm4, %v1370_v28  ;;  %v1581_v10 = vld [vmem:[%s7096_s28 + $0x58] sm:$0xff]  ;;  %v1582_v11 = vld [vmem:[%s7096_s28 + $0x60] sm:$0xff]  ;;  %v1583_v12 = vld [vmem:[%s7096_s28 + $0x68] sm:$0xff] }
 0x126   : > { %4878 = vmatprep.mubr.msk.f32.mxu1 %vm1405_vm4, %v1371_v29  ;;  %v1584_v13 = vld [vmem:[%s7096_s28 + $0x70] sm:$0xff]  ;;  %v1585_v14 = vld [vmem:[%s7096_s28 + $0x78] sm:$0xff]  ;;  %v1586_v36 = vld [vmem:[%s7096_s28 + $0x80] sm:$0xff] }
 0x127   : > { %v1587_v15 = vld [vmem:[%s7096_s28 + $0x88] sm:$0xff]  ;;  %v1588_v16 = vld [vmem:[%s7096_s28 + $0x90] sm:$0xff]  ;;  %v1589_v17 = vld [vmem:[%s7096_s28 + $0x98] sm:$0xff] }
 0x128   : > { %v1590_v18 = vld [vmem:[%s7096_s28 + $0xa0] sm:$0xff]  ;;  %v1591_v19 = vld [vmem:[%s7096_s28 + $0xa8] sm:$0xff]  ;;  %v1592_v20 = vld [vmem:[%s7096_s28 + $0xb0] sm:$0xff] }
 0x129   : > { %4879 = vmatmul.mubr.msk.f32.gmra.mxu1 %vm1405_vm4, %v1372_v30  ;;  %v1593_v21 = vld [vmem:[%s7096_s28 + $0xb8] sm:$0xff]  ;;  %v1594_v22 = vld [vmem:[%s7096_s28 + $0xc0] sm:$0xff]  ;;  %v1595_v23 = vld [vmem:[%s7096_s28 + $0xc8] sm:$0xff] }
 0x12a   : > { %4881 = vmatprep.mubr.msk.f32.mxu1 %vm1405_vm4, %v1373_v31  ;;  %v1596_v24 = vld [vmem:[%s7096_s28 + $0xd0] sm:$0xff]  ;;  %v1597_v25 = vld [vmem:[%s7096_s28 + $0xd8] sm:$0xff]  ;;  %v1598_v26 = vld [vmem:[%s7096_s28 + $0xe0] sm:$0xff] }
 0x12b   : > { %v1599_v27 = vld [vmem:[%s7096_s28 + $0xe8] sm:$0xff]  ;;  %v1600_v28 = vld [vmem:[%s7096_s28 + $0xf0] sm:$0xff]  ;;  %v1601_v29 = vld [vmem:[%s7096_s28 + $0xf8] sm:$0xff] }
 0x12c   : > { %v2245_v30 = vld [vmem:[%s7097_s27] sm:$0xff]  ;;  %v2246_v31 = vld [vmem:[%s7097_s27 + $0x8] sm:$0xff] }
 0x12d   : > { %4882 = vmatmul.mubr.msk.f32.gmra.mxu1 %vm1405_vm4, %v1374_v32  ;;  %v2247_v32 = vld [vmem:[%s7097_s27 + $0x10] sm:$0xff] }
 0x12e   : > { %4884 = vmatprep.mubr.msk.f32.mxu1 %vm1405_vm4, %v1375_v33  ;;  %v2248_v33 = vld [vmem:[%s7097_s27 + $0x18] sm:$0xff] }
 0x131   : > { %4885 = vmatmul.mubr.msk.f32.gmra.mxu1 %vm1405_vm4, %v1376_v34  ;;  %v2249_v34 = vld [vmem:[%s7097_s27 + $0x20] sm:$0xff] }
 0x132   : > { %4887 = vmatprep.mubr.msk.f32.mxu1 %vm1405_vm4, %v1377_v35  ;;  %v2250_v35 = vld [vmem:[%s7097_s27 + $0x28] sm:$0xff] }
 0x135   : > { %4888 = vmatmul.mubr.msk.f32.gmra.mxu1 %vm1405_vm4, %v1378_v37  ;;  %v2251_v37 = vld [vmem:[%s7097_s27 + $0x30] sm:$0xff] }
 0x136   : > { %4890 = vmatprep.mubr.msk.f32.mxu1 %vm1405_vm4, %v1379_v38  ;;  %v2252_v38 = vld [vmem:[%s7097_s27 + $0x38] sm:$0xff] }
 0x139   : > { %4891 = vmatmul.mubr.msk.f32.gmra.mxu1 %vm1405_vm4, %v1380_v39  ;;  %v2253_v39 = vld [vmem:[%s7097_s27 + $0x40] sm:$0xff] }
 0x13a   : > { %4893 = vmatprep.mubr.msk.f32.mxu1 %vm1405_vm4, %v1381_v40  ;;  %v2254_v40 = vld [vmem:[%s7097_s27 + $0x48] sm:$0xff] }
 0x13d   : > { %4894 = vmatmul.mubr.msk.f32.gmra.mxu1 %vm1405_vm4, %v1382_v41  ;;  %v2255_v41 = vld [vmem:[%s7097_s27 + $0x50] sm:$0xff] }
 0x13e   : > { %4896 = vmatprep.mubr.msk.f32.mxu1 %vm1405_vm4, %v1383_v42  ;;  %v2256_v42 = vld [vmem:[%s7097_s27 + $0x58] sm:$0xff] }
 0x141   : > { %4897 = vmatmul.mubr.msk.f32.gmra.mxu1 %vm1405_vm4, %v1384_v43  ;;  %v2257_v43 = vld [vmem:[%s7097_s27 + $0x60] sm:$0xff] }
 0x142   : > { %4899 = vmatprep.mubr.msk.f32.mxu1 %vm1405_vm4, %v1385_v44  ;;  %v2258_v44 = vld [vmem:[%s7097_s27 + $0x68] sm:$0xff] }
 0x145   : > { %4900 = vmatmul.mubr.msk.f32.gmra.mxu1 %vm1405_vm4, %v1386_v45  ;;  %v2259_v45 = vld [vmem:[%s7097_s27 + $0x70] sm:$0xff] }
 0x146   : > { %4902 = vmatprep.mubr.msk.f32.mxu1 %vm1405_vm4, %v1387_v46  ;;  %v2260_v46 = vld [vmem:[%s7097_s27 + $0x78] sm:$0xff] }
 0x149   : > { %4903 = vmatmul.mubr.msk.f32.gmra.mxu1 %vm1405_vm4, %v1388_v47  ;;  %v2261_v47 = vld [vmem:[%s7097_s27 + $0x80] sm:$0xff] }
 0x14a   : > { %4905 = vmatprep.mubr.msk.f32.mxu1 %vm1405_vm4, %v1389_v48  ;;  %v2262_v48 = vld [vmem:[%s7097_s27 + $0x88] sm:$0xff] }
 0x14d   : > { %4906 = vmatmul.mubr.msk.f32.gmra.mxu1 %vm1405_vm4, %v1390_v49  ;;  %v2263_v49 = vld [vmem:[%s7097_s27 + $0x90] sm:$0xff] }
 0x14e   : > { %4908 = vmatprep.mubr.msk.f32.mxu1 %vm1405_vm4, %v1391_v50  ;;  %v2264_v50 = vld [vmem:[%s7097_s27 + $0x98] sm:$0xff] }
 0x151   : > { %4909 = vmatmul.mubr.msk.f32.gmra.mxu1 %vm1405_vm4, %v1392_v51  ;;  %v2265_v51 = vld [vmem:[%s7097_s27 + $0xa0] sm:$0xff] }
 0x152   : > { %4911 = vmatprep.mubr.msk.f32.mxu1 %vm1405_vm4, %v1393_v52  ;;  %v2266_v52 = vld [vmem:[%s7097_s27 + $0xa8] sm:$0xff] }
 0x155   : > { %4912 = vmatmul.mubr.msk.f32.gmra.mxu1 %vm1405_vm4, %v1394_v53  ;;  %v2267_v53 = vld [vmem:[%s7097_s27 + $0xb0] sm:$0xff] }
 0x156   : > { %4914 = vmatprep.mubr.msk.f32.mxu1 %vm1405_vm4, %v1395_v54  ;;  %v2268_v54 = vld [vmem:[%s7097_s27 + $0xb8] sm:$0xff] }
 0x159   : > { %4915 = vmatmul.mubr.msk.f32.gmra.mxu1 %vm1405_vm4, %v1396_v55  ;;  %v2269_v55 = vld [vmem:[%s7097_s27 + $0xc0] sm:$0xff] }
 0x15a   : > { %4917 = vmatprep.mubr.msk.f32.mxu1 %vm1405_vm4, %v1397_v56  ;;  %v3004_v56 = vld [vmem:[%s5377_s2 + $0x18] sm:$0xff] }
 0x15b   : > { %4975 = vmatprep.subr.mxu1 %v3004_v56 }
 0x15c   : > { %4976 = vmatpush3.msra.mxu1 %v3004_v56 }
 0x15d   : > { %4918 = vmatmul.mubr.msk.f32.gmra.mxu1 %vm1405_vm4, %v1398_v57  ;;  %v2270_v57 = vld [vmem:[%s7097_s27 + $0xc8] sm:$0xff] }
 0x15e   : > { %4920 = vmatprep.mubr.msk.f32.mxu1 %vm1405_vm4, %v1399_v58  ;;  %v2271_v58 = vld [vmem:[%s7097_s27 + $0xd0] sm:$0xff] }
 0x161   : > { %4921 = vmatmul.mubr.msk.f32.gmra.mxu1 %vm1405_vm4, %v1400_v59  ;;  %v2272_v59 = vld [vmem:[%s7097_s27 + $0xd8] sm:$0xff] }
 0x1db   : > { %v4803_v60 = vpop.f32.mrf.mxu0 }
 0x1dc   : > { %4815 = vmatprep.subr.mxu0 %v4803_v60 }
 0x1dd   : > { %v1478_v61 = vpop.f32.mrf.mxu0  ;;  %4816 = vmatpush3.msra.mxu0 %v4803_v60  ;;  %v4814_v63 = vpop.f32.mrf.mxu1  ;;  %v2273_v60 = vld [vmem:[%s7097_s27 + $0xe0] sm:$0xff] }
 0x1de   : > { %4817 = vmatprep.subr.mxu0 %v1478_v61 }
 0x1df   : > { %4818 = vmatpush3.msra.mxu0 %v1478_v61  ;;  %v1557_v1 = vpop.f32.mrf.mxu1  ;;  %v2274_v61 = vld [vmem:[%s7097_s27 + $0xe8] sm:$0xff] }
 0x1e0   : > { %4820 = vmatmul.mubr.msk.f32.vlgmr.msra.gmra.mxu0 %vm1602_vm5, %v1571_v62  ;;  %4923 = vmatprep.subr.mxu0 %v4814_v63  ;;  %v2275_v62 = vld [vmem:[%s7097_s27 + $0xf0] sm:$0xff] }
 0x1e1   : > { %4822 = vmatprep.mubr.msk.f32.mxu0 %vm1602_vm5, %v1572_v0  ;;  %4924 = vmatpush3.msra.mxu0 %v4814_v63  ;;  %v2276_v63 = vld [vmem:[%s7097_s27 + $0xf8] sm:$0xff]  ;;  %v3003_v0 = vld [vmem:[%s5377_s2 + $0x10] sm:$0xff] }
 0x1e2   : > { %4925 = vmatprep.subr.mxu0 %v1557_v1  ;;  %4977 = vmatprep.subr.mxu1 %v3003_v0 }
 0x1e3   : > { %4926 = vmatpush3.msra.mxu0 %v1557_v1  ;;  %4978 = vmatpush3.msra.mxu1 %v3003_v0  ;;  %v3002_v1 = vld [vmem:[%s5377_s2 + $0x8] sm:$0xff] }
 0x1e4   : > { %4823 = vmatmul.mubr.msk.f32.gmra.mxu0 %vm1602_vm5, %v1573_v2  ;;  %4979 = vmatprep.subr.mxu1 %v3002_v1  ;;  %v3001_v2 = vld [vmem:[%s5377_s2] sm:$0xff] }
 0x1e5   : > { %4825 = vmatprep.mubr.msk.f32.mxu0 %vm1602_vm5, %v1574_v3  ;;  %4980 = vmatpush3.msra.mxu1 %v3002_v1  ;;  %v4877_v3 = vpop.f32.mrf.mxu1 }
 0x1e6   : > { %4981 = vmatprep.subr.mxu1 %v3001_v2 }
 0x1e7   : > { %4982 = vmatpush3.msra.mxu1 %v3001_v2 }
 0x1e8   : > { %4826 = vmatmul.mubr.msk.f32.gmra.mxu0 %vm1602_vm5, %v1575_v4 }
 0x1e9   : > { %4828 = vmatprep.mubr.msk.f32.mxu0 %vm1602_vm5, %v1576_v5  ;;  %v2086_v5 = vpop.f32.mrf.mxu1 }
 0x1ec   : > { %4829 = vmatmul.mubr.msk.f32.gmra.mxu0 %vm1602_vm5, %v1577_v6 }
 0x1ed   : > { %4831 = vmatprep.mubr.msk.f32.mxu0 %vm1602_vm5, %v1578_v7 }
 0x1f0   : > { %4832 = vmatmul.mubr.msk.f32.gmra.mxu0 %vm1602_vm5, %v1579_v8  ;;  %v4880_v8 = vpop.f32.mrf.mxu1 }
 0x1f1   : > { %4834 = vmatprep.mubr.msk.f32.mxu0 %vm1602_vm5, %v1580_v9 }
 0x1f4   : > { %4835 = vmatmul.mubr.msk.f32.gmra.mxu0 %vm1602_vm5, %v1581_v10 }
 0x1f5   : > { %4837 = vmatprep.mubr.msk.f32.mxu0 %vm1602_vm5, %v1582_v11  ;;  %v2096_v11 = vpop.f32.mrf.mxu1 }
 0x1f8   : > { %4838 = vmatmul.mubr.msk.f32.gmra.mxu0 %vm1602_vm5, %v1583_v12 }
 0x1f9   : > { %4840 = vmatprep.mubr.msk.f32.mxu0 %vm1602_vm5, %v1584_v13 }
 0x1fc   : > { %4841 = vmatmul.mubr.msk.f32.gmra.mxu0 %vm1602_vm5, %v1585_v14  ;;  %v4883_v14 = vpop.f32.mrf.mxu1 }
 0x1fd   : > { %4843 = vmatprep.mubr.msk.f32.mxu0 %vm1602_vm5, %v1586_v36 }
 0x200   : > { %4844 = vmatmul.mubr.msk.f32.gmra.mxu0 %vm1602_vm5, %v1587_v15 }
 0x201   : > { %4846 = vmatprep.mubr.msk.f32.mxu0 %vm1602_vm5, %v1588_v16  ;;  %v2106_v16 = vpop.f32.mrf.mxu1 }
 0x204   : > { %4847 = vmatmul.mubr.msk.f32.gmra.mxu0 %vm1602_vm5, %v1589_v17 }
 0x205   : > { %4849 = vmatprep.mubr.msk.f32.mxu0 %vm1602_vm5, %v1590_v18 }
 0x208   : > { %4850 = vmatmul.mubr.msk.f32.gmra.mxu0 %vm1602_vm5, %v1591_v19  ;;  %v5932_v19 = vpop.f32.mrf.mxu1 }
 0x209   : > { %4852 = vmatprep.mubr.msk.f32.mxu0 %vm1602_vm5, %v1592_v20 }
 0x20c   : > { %4853 = vmatmul.mubr.msk.f32.gmra.mxu0 %vm1602_vm5, %v1593_v21 }
 0x20d   : > { %4855 = vmatprep.mubr.msk.f32.mxu0 %vm1602_vm5, %v1594_v22  ;;  %v5938_v22 = vpop.f32.mrf.mxu1 }
 0x210   : > { %4856 = vmatmul.mubr.msk.f32.gmra.mxu0 %vm1602_vm5, %v1595_v23 }
 0x211   : > { %4858 = vmatprep.mubr.msk.f32.mxu0 %vm1602_vm5, %v1596_v24 }
 0x214   : > { %4859 = vmatmul.mubr.msk.f32.gmra.mxu0 %vm1602_vm5, %v1597_v25  ;;  %v5944_v25 = vpop.f32.mrf.mxu1 }
 0x215   : > { %4861 = vmatprep.mubr.msk.f32.mxu0 %vm1602_vm5, %v1598_v26 }
 0x218   : > { %4862 = vmatmul.mubr.msk.f32.gmra.mxu0 %vm1602_vm5, %v1599_v27 }
 0x219   : > { %4864 = vmatprep.mubr.msk.f32.mxu0 %vm1602_vm5, %v1600_v28  ;;  %v5950_v28 = vpop.f32.mrf.mxu1 }
 0x21c   : > { %4865 = vmatmul.mubr.msk.f32.gmra.mxu0 %vm1602_vm5, %v1601_v29 }
 0x21d   : > { %4927 = vmatprep.mubr.msk.f32.mxu0 %vm1602_vm5, %v2245_v30 }
 0x220   : > { %4928 = vmatmul.mubr.msk.f32.vlgmr.msra.gmra.mxu0 %vm1602_vm5, %v2246_v31  ;;  %v5956_v31 = vpop.f32.mrf.mxu1 }
 0x221   : > { %4930 = vmatprep.mubr.msk.f32.mxu0 %vm1602_vm5, %v2247_v32 }
 0x224   : > { %4931 = vmatmul.mubr.msk.f32.gmra.mxu0 %vm1602_vm5, %v2248_v33 }
 0x225   : > { %4933 = vmatprep.mubr.msk.f32.mxu0 %vm1602_vm5, %v2249_v34  ;;  %v5962_v34 = vpop.f32.mrf.mxu1 }
 0x228   : > { %4934 = vmatmul.mubr.msk.f32.gmra.mxu0 %vm1602_vm5, %v2250_v35 }
 0x229   : > { %4936 = vmatprep.mubr.msk.f32.mxu0 %vm1602_vm5, %v2251_v37 }
 0x22c   : > { %4937 = vmatmul.mubr.msk.f32.gmra.mxu0 %vm1602_vm5, %v2252_v38  ;;  %v5968_v38 = vpop.f32.mrf.mxu1 }
 0x22d   : > { %4939 = vmatprep.mubr.msk.f32.mxu0 %vm1602_vm5, %v2253_v39 }
 0x230   : > { %4940 = vmatmul.mubr.msk.f32.gmra.mxu0 %vm1602_vm5, %v2254_v40 }
 0x231   : > { %4942 = vmatprep.mubr.msk.f32.mxu0 %vm1602_vm5, %v2255_v41  ;;  %v5974_v41 = vpop.f32.mrf.mxu1 }
 0x234   : > { %4943 = vmatmul.mubr.msk.f32.gmra.mxu0 %vm1602_vm5, %v2256_v42 }
 0x235   : > { %4945 = vmatprep.mubr.msk.f32.mxu0 %vm1602_vm5, %v2257_v43 }
 0x238   : > { %4946 = vmatmul.mubr.msk.f32.gmra.mxu0 %vm1602_vm5, %v2258_v44  ;;  %v5980_v44 = vpop.f32.mrf.mxu1 }
 0x239   : > { %4948 = vmatprep.mubr.msk.f32.mxu0 %vm1602_vm5, %v2259_v45 }
 0x23c   : > { %4949 = vmatmul.mubr.msk.f32.gmra.mxu0 %vm1602_vm5, %v2260_v46 }
 0x23d   : > { %4951 = vmatprep.mubr.msk.f32.mxu0 %vm1602_vm5, %v2261_v47  ;;  %v5986_v47 = vpop.f32.mrf.mxu1 }
 0x240   : > { %4952 = vmatmul.mubr.msk.f32.gmra.mxu0 %vm1602_vm5, %v2262_v48 }
 0x241   : > { %4954 = vmatprep.mubr.msk.f32.mxu0 %vm1602_vm5, %v2263_v49 }
 0x244   : > { %4955 = vmatmul.mubr.msk.f32.gmra.mxu0 %vm1602_vm5, %v2264_v50  ;;  %v5992_v50 = vpop.f32.mrf.mxu1 }
 0x245   : > { %4957 = vmatprep.mubr.msk.f32.mxu0 %vm1602_vm5, %v2265_v51 }
 0x246   : > { %v6003_v56 = vpop.f32.mrf.mxu1 }
 0x248   : > { %4958 = vmatmul.mubr.msk.f32.gmra.mxu0 %vm1602_vm5, %v2266_v52  ;;  %v6013_v1 = vpop.f32.mrf.mxu1 }
 0x249   : > { %4960 = vmatprep.mubr.msk.f32.mxu0 %vm1602_vm5, %v2267_v53 }
 0x24c   : > { %4961 = vmatmul.mubr.msk.f32.gmra.mxu0 %vm1602_vm5, %v2268_v54  ;;  %v6001_v54 = vld [vmem:[%s7098_s0] ss:$0 sm:$0xff] }
 0x24d   : > { %4963 = vmatprep.mubr.msk.f32.mxu0 %vm1602_vm5, %v2269_v55 }
 0x250   : > { %4964 = vmatmul.mubr.msk.f32.gmra.mxu0 %vm1602_vm5, %v2270_v57 }
 0x251   : > { %4966 = vmatprep.mubr.msk.f32.mxu0 %vm1602_vm5, %v2271_v58 }
 0x254   : > { %4967 = vmatmul.mubr.msk.f32.gmra.mxu0 %vm1602_vm5, %v2272_v59 }
 0x255   : > { %4969 = vmatprep.mubr.msk.f32.mxu0 %vm1602_vm5, %v2273_v60 }
 0x258   : > { %4970 = vmatmul.mubr.msk.f32.gmra.mxu0 %vm1602_vm5, %v2274_v61 }
 0x259   : > { %4972 = vmatprep.mubr.msk.f32.mxu0 %vm1602_vm5, %v2275_v62 }
 0x25c   : > { %4973 = vmatmul.mubr.msk.f32.gmra.mxu0 %vm1602_vm5, %v2276_v63  ;;  %v6011_v63 = vld [vmem:[%s7099_s9] ss:$0 sm:$0xff] }
 0x2a0   : > { %v4821_v4 = vpop.f32.mrf.mxu0 }
 0x2a1   : > { %v2092_v52 = vadd.f32 %v4877_v3, %v4821_v4 }
 0x2a2   : > { %v1765_v6 = vpop.f32.mrf.mxu0 }
 0x2a3   : > { %v2087_v55 = vadd.f32 %v2086_v5, %v1765_v6 }
 0x2a4   : > { %v4824_v7 = vpop.f32.mrf.mxu0 }
 0x2a5   : > { %v2102_v59 = vadd.f32 %v4880_v8, %v4824_v7 }
 0x2a6   : > { %v1775_v9 = vpop.f32.mrf.mxu0 }
 0x2a7   : > { %v2097_v0 = vadd.f32 %v2096_v11, %v1775_v9 }
 0x2a8   : > { %v4827_v10 = vpop.f32.mrf.mxu0 }
 0x2a9   : > { %v2112_v5 = vadd.f32 %v4883_v14, %v4827_v10 }
 0x2aa   : > { %v5920_v12 = vpop.f32.mrf.mxu0 }
 0x2ab   : > { %v2107_v11 = vadd.f32 %v2106_v16, %v5920_v12 }
 0x2ac   : > { %v5922_v13 = vpop.f32.mrf.mxu0 }
 0x2ae   : > { %v5924_v36 = vpop.f32.mrf.mxu0 }
 0x2b0   : > { %v5926_v15 = vpop.f32.mrf.mxu0 }
 0x2b2   : > { %v5928_v17 = vpop.f32.mrf.mxu0 }
 0x2b4   : > { %v5930_v18 = vpop.f32.mrf.mxu0 }
 0x2b6   : > { %v5934_v20 = vpop.f32.mrf.mxu0 }
 0x2b8   : > { %v5936_v21 = vpop.f32.mrf.mxu0 }
 0x2ba   : > { %v5940_v23 = vpop.f32.mrf.mxu0 }
 0x2bc   : > { %v5942_v24 = vpop.f32.mrf.mxu0 }
 0x2be   : > { %v5946_v26 = vpop.f32.mrf.mxu0 }
 0x2c0   : > { %v5948_v27 = vpop.f32.mrf.mxu0 }
 0x2c2   : > { %v5952_v29 = vpop.f32.mrf.mxu0 }
 0x2c4   : > { %v5954_v30 = vpop.f32.mrf.mxu0 }
 0x2c6   : > { %v5958_v32 = vpop.f32.mrf.mxu0 }
 0x2c8   : > { %v5960_v33 = vpop.f32.mrf.mxu0 }
 0x2ca   : > { %v5964_v35 = vpop.f32.mrf.mxu0 }
 0x2cc   : > { %v5966_v37 = vpop.f32.mrf.mxu0 }
 0x2ce   : > { %v5970_v39 = vpop.f32.mrf.mxu0 }
 0x2d0   : > { %v5972_v40 = vpop.f32.mrf.mxu0 }
 0x2d2   : > { %v5976_v42 = vpop.f32.mrf.mxu0 }
 0x2d4   : > { %v5978_v43 = vpop.f32.mrf.mxu0 }
 0x2d6   : > { %v5982_v45 = vpop.f32.mrf.mxu0 }
 0x2d8   : > { %v5984_v46 = vpop.f32.mrf.mxu0 }
 0x2da   : > { %v5988_v48 = vpop.f32.mrf.mxu0 }
 0x2dc   : > { %v5990_v49 = vpop.f32.mrf.mxu0 }
 0x2de   : > { %v5994_v51 = vpop.f32.mrf.mxu0 }
 0x2e0   : > { %v4929_v53 = vpop.f32.mrf.mxu0 }
 0x2e1   : > { %v2599_v57 = vadd.f32 %v4929_v53, %v2092_v52 }
 0x2e2   : > { %v2439_v58 = vpop.f32.mrf.mxu0 }
 0x2e3   : > { %v2638_v60 = vadd.f32 %v6001_v54, %v2599_v57  ;;  %v2598_v61 = vadd.f32 %v2439_v58, %v2087_v55  ;;  %v6026_v55 = vpop.f32.mrf.mxu1 }
 0x2e4   : > { %v4932_v62 = vpop.f32.mrf.mxu0 }
 0x2e5   : > { %v6015_v2 = vmax.f32 %v2638_v60, 0.0  ;;  %v2637_v3 = vadd.f32 %v6001_v54, %v2598_v61  ;;  %v2601_v4 = vadd.f32 %v4932_v62, %v2102_v59  ;;  %v2122_v59 = vadd.f32 %v5932_v19, %v5922_v13 }
 0x2e6   : > { %v2449_v6 = vpop.f32.mrf.mxu0  ;;  %v2117_v13 = vadd.f32 %v5938_v22, %v5924_v36 }
 0x2e7   : > { %7100 = vst [vmem:[#allocation5_spill] sm:$0xff] %v6015_v2  ;;  %2702 = vst.msk [vmem:[#allocation3 + $0x8] sm:$0xff] %vm1405_vm4, %v6015_v2  ;;  %v6020_v7 = vmax.f32 %v2637_v3, 0.0  ;;  %v2640_v8 = vadd.f32 %v6001_v54, %v2601_v4  ;;  %v2600_v52 = vadd.f32 %v2449_v6, %v2097_v0  ;;  %v2741_v9 = vmul.f32 %v6011_v63, %v6015_v2  ;;  %v6052_v4 = vpop.f32.mrf.mxu1 }
 0x2e8   : > { %v4935_v53 = vpop.f32.mrf.mxu0 }
 0x2e9   : > { %7101 = vst [vmem:[#allocation6_spill] sm:$0xff] %v6020_v7  ;;  %2701 = vst.msk [vmem:[#allocation3] sm:$0xff] %vm1405_vm4, %v6020_v7  ;;  %v6030_v10 = vmax.f32 %v2640_v8, 0.0  ;;  %v2639_v14 = vadd.f32 %v6001_v54, %v2600_v52  ;;  %v2603_v57 = vadd.f32 %v4935_v53, %v2112_v5  ;;  %4983 = vmatprep.mubr.msk.f32.mxu1 %vm1405_vm4, %v6020_v7  ;;  %v2775_v58 = vsel %vm1405_vm4, %v2741_v9, 0.0 }
 0x2ea   : > { %2776 = vadd.xlane.f32.xlu0 %v2775_v58  ;;  %v2459_v12 = vpop.f32.mrf.mxu0  ;;  %4984 = vmatmul.mubr.msk.f32.vlgmr.msra.gmra.mxu1 %vm1405_vm4, %v6015_v2  ;;  %v2740_v16 = vmul.f32 %v6011_v63, %v6020_v7  ;;  %v2132_v9 = vadd.f32 %v5944_v25, %v5926_v15  ;;  %v6078_v25 = vpop.f32.mrf.mxu1 }
 0x2eb   : > { %7102 = vst [vmem:[#allocation7_spill] sm:$0xff] %v6030_v10  ;;  %2704 = vst.msk [vmem:[#allocation3 + $0x18] sm:$0xff] %vm1405_vm4, %v6030_v10  ;;  %v6044_v60 = vmax.f32 %v2639_v14, 0.0  ;;  %v2642_v61 = vadd.f32 %v6001_v54, %v2603_v57  ;;  %v2602_v62 = vadd.f32 %v2459_v12, %v2107_v11  ;;  %v2743_v0 = vmul.f32 %v6011_v63, %v6030_v10 }
 0x2ec   : > { %v4938_v19 = vpop.f32.mrf.mxu0  ;;  %v2772_v3 = vsel %vm1405_vm4, %v2740_v16, 0.0  ;;  %v2127_v57 = vadd.f32 %v5950_v28, %v5928_v17  ;;  %v2142_v28 = vadd.f32 %v5956_v31, %v5930_v18 }
 0x2ed   : > { %7103 = vst [vmem:[#allocation8_spill] sm:$0xff] %v6044_v60  ;;  %2703 = vst.msk [vmem:[#allocation3 + $0x10] sm:$0xff] %vm1405_vm4, %v6044_v60  ;;  %v6056_v5 = vmax.f32 %v2642_v61, 0.0  ;;  %v2641_v6 = vadd.f32 %v6001_v54, %v2602_v62  ;;  %v2605_v8 = vadd.f32 %v4938_v19, %v2122_v59  ;;  %4986 = vmatprep.mubr.msk.f32.mxu1 %vm1405_vm4, %v6044_v60  ;;  %v2781_v52 = vsel %vm1405_vm4, %v2743_v0, 0.0 }
 0x2ee   : > { %2773 = vadd.xlane.f32.xlu0 %v2772_v3  ;;  %2782 = vadd.xlane.f32.xlu1 %v2781_v52  ;;  %v2469_v36 = vpop.f32.mrf.mxu0  ;;  %v2742_v22 = vmul.f32 %v6011_v63, %v6044_v60  ;;  %v6104_v52 = vpop.f32.mrf.mxu1 }
 0x2ef   : > { %7104 = vst [vmem:[#allocation9_spill] sm:$0xff] %v6056_v5  ;;  %2706 = vst.msk [vmem:[#allocation3 + $0x28] sm:$0xff] %vm1405_vm4, %v6056_v5  ;;  %v6068_v11 = vmax.f32 %v2641_v6, 0.0  ;;  %v2644_v53 = vadd.f32 %v6001_v54, %v2605_v8  ;;  %v2604_v14 = vadd.f32 %v2469_v36, %v2117_v13  ;;  %4987 = vmatmul.mubr.msk.f32.gmra.mxu1 %vm1405_vm4, %v6030_v10 }
 0x2f0   : > { %v4941_v58 = vpop.f32.mrf.mxu0  ;;  %v2778_v59 = vsel %vm1405_vm4, %v2742_v22, 0.0  ;;  %v2745_v15 = vmul.f32 %v6011_v63, %v6056_v5  ;;  %v2137_v6 = vadd.f32 %v5962_v34, %v5934_v20  ;;  %v2152_v34 = vadd.f32 %v5968_v38, %v5936_v21 }
 0x2f1   : > { %7105 = vst [vmem:[#allocation10_spill] sm:$0xff] %v6068_v11  ;;  %2705 = vst.msk [vmem:[#allocation3 + $0x20] sm:$0xff] %vm1405_vm4, %v6068_v11  ;;  %v6082_v12 = vmax.f32 %v2644_v53, 0.0  ;;  %v2643_v16 = vadd.f32 %v6001_v54, %v2604_v14  ;;  %v2607_v61 = vadd.f32 %v4941_v58, %v2132_v9  ;;  %4989 = vmatprep.mubr.msk.f32.mxu1 %vm1405_vm4, %v6068_v11 }
 0x2f2   : > { %v2744_v17 = vmul.f32 %v6011_v63, %v6068_v11  ;;  %2779 = vadd.xlane.f32.xlu1 %v2778_v59  ;;  %v2479_v62 = vpop.f32.mrf.mxu0  ;;  %v2787_v31 = vsel %vm1405_vm4, %v2745_v15, 0.0  ;;  %v2147_v15 = vadd.f32 %v5974_v41, %v5940_v23  ;;  %v2162_v41 = vadd.f32 %v5980_v44, %v5942_v24 }
 0x2f3   : > { %7106 = vst [vmem:[#allocation11_spill] sm:$0xff] %v6082_v12  ;;  %2708 = vst.msk [vmem:[#allocation3 + $0x38] sm:$0xff] %vm1405_vm4, %v6082_v12  ;;  %v6093_v0 = vmax.f32 %v2643_v16, 0.0  ;;  %v2646_v13 = vadd.f32 %v6001_v54, %v2607_v61  ;;  %v2606_v19 = vadd.f32 %v2479_v62, %v2127_v57  ;;  %4990 = vmatmul.mubr.msk.f32.gmra.mxu1 %vm1405_vm4, %v6056_v5  ;;  %v6130_v61 = vpop.f32.mrf.mxu1 }
 0x2f4   : > { %v2784_v3 = vsel %vm1405_vm4, %v2744_v17, 0.0  ;;  %v4944_v18 = vpop.f32.mrf.mxu0  ;;  %v2747_v8 = vmul.f32 %v6011_v63, %v6082_v12 }
 0x2f5   : > { %7107 = vst [vmem:[#allocation12_spill] sm:$0xff] %v6093_v0  ;;  %2785 = vadd.xlane.f32.xlu0 %v2784_v3  ;;  %2707 = vst.msk [vmem:[#allocation3 + $0x30] sm:$0xff] %vm1405_vm4, %v6093_v0  ;;  %v6108_v36 = vmax.f32 %v2646_v13, 0.0  ;;  %v2645_v22 = vadd.f32 %v6001_v54, %v2606_v19  ;;  %v2609_v9 = vadd.f32 %v4944_v18, %v2142_v28  ;;  %4992 = vmatprep.mubr.msk.f32.mxu1 %vm1405_vm4, %v6093_v0 }
 0x2f6   : > { %v2746_v20 = vmul.f32 %v6011_v63, %v6093_v0  ;;  %2788 = vadd.xlane.f32.xlu1 %v2787_v31  ;;  %v2489_v53 = vpop.f32.mrf.mxu0  ;;  %v2793_v38 = vsel %vm1405_vm4, %v2747_v8, 0.0  ;;  %v2157_v31 = vadd.f32 %v5986_v47, %v5946_v26  ;;  %v2172_v47 = vadd.f32 %v5992_v50, %v5948_v27 }
 0x2f7   : > { %7108 = vst [vmem:[#allocation13_spill] sm:$0xff] %v6108_v36  ;;  %2710 = vst.msk [vmem:[#allocation3 + $0x48] sm:$0xff] %vm1405_vm4, %v6108_v36  ;;  %v6119_v14 = vmax.f32 %v2645_v22, 0.0  ;;  %v2648_v57 = vadd.f32 %v6001_v54, %v2609_v9  ;;  %v2608_v58 = vadd.f32 %v2489_v53, %v2137_v6  ;;  %4993 = vmatmul.mubr.msk.f32.gmra.mxu1 %vm1405_vm4, %v6082_v12  ;;  %v6156_v22 = vpop.f32.mrf.mxu1 }
 0x2f8   : > { %v2790_v59 = vsel %vm1405_vm4, %v2746_v20, 0.0  ;;  %v4947_v21 = vpop.f32.mrf.mxu0  ;;  %v2749_v16 = vmul.f32 %v6011_v63, %v6108_v36 }
 0x2f9   : > { %7109 = vst [vmem:[#allocation14_spill] sm:$0xff] %v6119_v14  ;;  %2791 = vadd.xlane.f32.xlu0 %v2790_v59  ;;  %2709 = vst.msk [vmem:[#allocation3 + $0x40] sm:$0xff] %vm1405_vm4, %v6119_v14  ;;  %v6134_v17 = vmax.f32 %v2648_v57, 0.0  ;;  %v2647_v28 = vadd.f32 %v6001_v54, %v2608_v58  ;;  %v2611_v62 = vadd.f32 %v4947_v21, %v2152_v34  ;;  %4995 = vmatprep.mubr.msk.f32.mxu1 %vm1405_vm4, %v6119_v14 }
 0x2fa   : > { %v2748_v23 = vmul.f32 %v6011_v63, %v6119_v14  ;;  %2794 = vadd.xlane.f32.xlu1 %v2793_v38  ;;  %v2499_v13 = vpop.f32.mrf.mxu0  ;;  %v2799_v44 = vsel %vm1405_vm4, %v2749_v16, 0.0  ;;  %v2167_v21 = vadd.f32 %v6003_v56, %v5952_v29  ;;  %v6182_v16 = vpop.f32.mrf.mxu1  ;;  %v2182_v56 = vadd.f32 %v6013_v1, %v5954_v30 }
 0x2fb   : > { %7110 = vst [vmem:[#allocation15_spill] sm:$0xff] %v6134_v17  ;;  %2712 = vst.msk [vmem:[#allocation3 + $0x58] sm:$0xff] %vm1405_vm4, %v6134_v17  ;;  %v6145_v19 = vmax.f32 %v2647_v28, 0.0  ;;  %v2650_v3 = vadd.f32 %v6001_v54, %v2611_v62  ;;  %v2610_v6 = vadd.f32 %v2499_v13, %v2147_v15  ;;  %4996 = vmatmul.mubr.msk.f32.gmra.mxu1 %vm1405_vm4, %v6108_v36 }
 0x2fc   : > { %v2796_v18 = vsel %vm1405_vm4, %v2748_v23, 0.0  ;;  %v4950_v24 = vpop.f32.mrf.mxu0  ;;  %v2751_v8 = vmul.f32 %v6011_v63, %v6134_v17 }
 0x2fd   : > { %7111 = vst [vmem:[#allocation16_spill] sm:$0xff] %v6145_v19  ;;  %2797 = vadd.xlane.f32.xlu0 %v2796_v18  ;;  %2711 = vst.msk [vmem:[#allocation3 + $0x50] sm:$0xff] %vm1405_vm4, %v6145_v19  ;;  %v6160_v9 = vmax.f32 %v2650_v3, 0.0  ;;  %v2649_v20 = vadd.f32 %v6001_v54, %v2610_v6  ;;  %v2613_v34 = vadd.f32 %v4950_v24, %v2162_v41  ;;  %4998 = vmatprep.mubr.msk.f32.mxu1 %vm1405_vm4, %v6145_v19 }
 0x2fe   : > { %v2750_v26 = vmul.f32 %v6011_v63, %v6145_v19  ;;  %2800 = vadd.xlane.f32.xlu1 %v2799_v44  ;;  %v2509_v53 = vpop.f32.mrf.mxu0  ;;  %v2805_v50 = vsel %vm1405_vm4, %v2751_v8, 0.0  ;;  %v6208_v44 = vpop.f32.mrf.mxu1 }
 0x2ff   : > { %7112 = vst [vmem:[#allocation17_spill] sm:$0xff] %v6160_v9  ;;  %2714 = vst.msk [vmem:[#allocation3 + $0x68] sm:$0xff] %vm1405_vm4, %v6160_v9  ;;  %v6171_v57 = vmax.f32 %v2649_v20, 0.0  ;;  %v2652_v58 = vadd.f32 %v6001_v54, %v2613_v34  ;;  %v2612_v59 = vadd.f32 %v2509_v53, %v2157_v31  ;;  %4999 = vmatmul.mubr.msk.f32.gmra.mxu1 %vm1405_vm4, %v6134_v17 }
 0x300   : > { %v2802_v15 = vsel %vm1405_vm4, %v2750_v26, 0.0  ;;  %v4953_v27 = vpop.f32.mrf.mxu0  ;;  %v2753_v38 = vmul.f32 %v6011_v63, %v6160_v9  ;;  %v2177_v31 = vadd.f32 %v6026_v55, %v5958_v32  ;;  %v2192_v55 = vadd.f32 %v6052_v4, %v5960_v33 }
 0x301   : > { %7113 = vst [vmem:[#allocation18_spill] sm:$0xff] %v6171_v57  ;;  %2803 = vadd.xlane.f32.xlu0 %v2802_v15  ;;  %2713 = vst.msk [vmem:[#allocation3 + $0x60] sm:$0xff] %vm1405_vm4, %v6171_v57  ;;  %v6186_v28 = vmax.f32 %v2652_v58, 0.0  ;;  %v2651_v62 = vadd.f32 %v6001_v54, %v2612_v59  ;;  %v2615_v23 = vadd.f32 %v4953_v27, %v2172_v47  ;;  %5001 = vmatprep.mubr.msk.f32.mxu1 %vm1405_vm4, %v6171_v57  ;;  %v2216_v27 = vpop.f32.mrf.mxu1 }
 0x302   : > { %v2752_v29 = vmul.f32 %v6011_v63, %v6171_v57  ;;  %2806 = vadd.xlane.f32.xlu1 %v2805_v50  ;;  %v2519_v41 = vpop.f32.mrf.mxu0  ;;  %v2811_v1 = vsel %vm1405_vm4, %v2753_v38, 0.0  ;;  %v2187_v15 = vadd.f32 %v6078_v25, %v5964_v35  ;;  %v2202_v25 = vadd.f32 %v6104_v52, %v5966_v37 }
 0x303   : > { %7114 = vst [vmem:[#allocation19_spill] sm:$0xff] %v6186_v28  ;;  %2716 = vst.msk [vmem:[#allocation3 + $0x78] sm:$0xff] %vm1405_vm4, %v6186_v28  ;;  %v6197_v13 = vmax.f32 %v2651_v62, 0.0  ;;  %v2654_v3 = vadd.f32 %v6001_v54, %v2615_v23  ;;  %v2614_v6 = vadd.f32 %v2519_v41, %v2167_v21  ;;  %5002 = vmatmul.mubr.msk.f32.gmra.mxu1 %vm1405_vm4, %v6160_v9 }
 0x304   : > { %v2808_v18 = vsel %vm1405_vm4, %v2752_v29, 0.0  ;;  %v4956_v30 = vpop.f32.mrf.mxu0  ;;  %v2755_v24 = vmul.f32 %v6011_v63, %v6186_v28 }
 0x305   : > { %7115 = vst [vmem:[#allocation20_spill] sm:$0xff] %v6197_v13  ;;  %2809 = vadd.xlane.f32.xlu0 %v2808_v18  ;;  %2715 = vst.msk [vmem:[#allocation3 + $0x70] sm:$0xff] %vm1405_vm4, %v6197_v13  ;;  %v6212_v8 = vmax.f32 %v2654_v3, 0.0  ;;  %v2653_v20 = vadd.f32 %v6001_v54, %v2614_v6  ;;  %v2617_v34 = vadd.f32 %v4956_v30, %v2182_v56  ;;  %5004 = vmatprep.mubr.msk.f32.mxu1 %vm1405_vm4, %v6197_v13 }
 0x306   : > { %v2754_v32 = vmul.f32 %v6011_v63, %v6197_v13  ;;  %2812 = vadd.xlane.f32.xlu1 %v2811_v1  ;;  %v2529_v26 = vpop.f32.mrf.mxu0  ;;  %v2817_v4 = vsel %vm1405_vm4, %v2755_v24, 0.0  ;;  %v2197_v6 = vadd.f32 %v6130_v61, %v5970_v39  ;;  %v2212_v61 = vadd.f32 %v6156_v22, %v5972_v40 }
 0x307   : > { %7116 = vst [vmem:[#allocation21_spill] sm:$0xff] %v6212_v8  ;;  %2718 = vst.msk [vmem:[#allocation3 + $0x88] sm:$0xff] %vm1405_vm4, %v6212_v8  ;;  %v6223_v47 = vmax.f32 %v2653_v20, 0.0  ;;  %v2656_v53 = vadd.f32 %v6001_v54, %v2617_v34  ;;  %v2616_v58 = vadd.f32 %v2529_v26, %v2177_v31  ;;  %5005 = vmatmul.mubr.msk.f32.gmra.mxu1 %vm1405_vm4, %v6186_v28  ;;  %v4919_v31 = vpop.f32.mrf.mxu1 }
 0x308   : > { %v2814_v59 = vsel %vm1405_vm4, %v2754_v32, 0.0  ;;  %v4959_v33 = vpop.f32.mrf.mxu0  ;;  %v2757_v21 = vmul.f32 %v6011_v63, %v6212_v8 }
 0x309   : > { %7117 = vst [vmem:[#allocation22_spill] sm:$0xff] %v6223_v47  ;;  %2815 = vadd.xlane.f32.xlu0 %v2814_v59  ;;  %2717 = vst.msk [vmem:[#allocation3 + $0x80] sm:$0xff] %vm1405_vm4, %v6223_v47  ;;  %v6236_v50 = vmax.f32 %v2656_v53, 0.0  ;;  %v2655_v38 = vadd.f32 %v6001_v54, %v2616_v58  ;;  %v2619_v62 = vadd.f32 %v4959_v33, %v2192_v55  ;;  %5007 = vmatprep.mubr.msk.f32.mxu1 %vm1405_vm4, %v6223_v47  ;;  %v2226_v59 = vpop.f32.mrf.mxu1 }
 0x30a   : > { %v2756_v35 = vmul.f32 %v6011_v63, %v6223_v47  ;;  %2818 = vadd.xlane.f32.xlu1 %v2817_v4  ;;  %v2539_v23 = vpop.f32.mrf.mxu0  ;;  %v2823_v52 = vsel %vm1405_vm4, %v2757_v21, 0.0  ;;  %v2207_v53 = vadd.f32 %v6182_v16, %v5976_v42  ;;  %v2222_v16 = vadd.f32 %v6208_v44, %v5978_v43 }
 0x30b   : > { %7118 = vst [vmem:[#allocation23_spill] sm:$0xff] %v6236_v50  ;;  %2720 = vst.msk [vmem:[#allocation3 + $0x98] sm:$0xff] %vm1405_vm4, %v6236_v50  ;;  %v6247_v29 = vmax.f32 %v2655_v38, 0.0  ;;  %v2658_v56 = vadd.f32 %v6001_v54, %v2619_v62  ;;  %v2618_v41 = vadd.f32 %v2539_v23, %v2187_v15  ;;  %5008 = vmatmul.mubr.msk.f32.gmra.mxu1 %vm1405_vm4, %v6212_v8 }
 0x30c   : > { %v2820_v3 = vsel %vm1405_vm4, %v2756_v35, 0.0  ;;  %v4962_v37 = vpop.f32.mrf.mxu0  ;;  %v2759_v18 = vmul.f32 %v6011_v63, %v6236_v50  ;;  %v2217_v23 = vadd.f32 %v2216_v27, %v5982_v45  ;;  %v2232_v27 = vadd.f32 %v4919_v31, %v5984_v46 }
 0x30d   : > { %7119 = vst [vmem:[#allocation24_spill] sm:$0xff] %v6247_v29  ;;  %2821 = vadd.xlane.f32.xlu0 %v2820_v3  ;;  %2719 = vst.msk [vmem:[#allocation3 + $0x90] sm:$0xff] %vm1405_vm4, %v6247_v29  ;;  %v6260_v30 = vmax.f32 %v2658_v56, 0.0  ;;  %v2657_v1 = vadd.f32 %v6001_v54, %v2618_v41  ;;  %v2621_v24 = vadd.f32 %v4962_v37, %v2202_v25  ;;  %5010 = vmatprep.mubr.msk.f32.mxu1 %vm1405_vm4, %v6247_v29  ;;  %v4922_v41 = vpop.f32.mrf.mxu1 }
 0x30e   : > { %v2758_v39 = vmul.f32 %v6011_v63, %v6247_v29  ;;  %2824 = vadd.xlane.f32.xlu1 %v2823_v52  ;;  %v2549_v20 = vpop.f32.mrf.mxu0  ;;  %v2829_v22 = vsel %vm1405_vm4, %v2759_v18, 0.0 }
 0x30f   : > { %7120 = vst [vmem:[#allocation25_spill] sm:$0xff] %v6260_v30  ;;  %2722 = vst.msk [vmem:[#allocation3 + $0xa8] sm:$0xff] %vm1405_vm4, %v6260_v30  ;;  %v6271_v34 = vmax.f32 %v2657_v1, 0.0  ;;  %v2660_v32 = vadd.f32 %v6001_v54, %v2621_v24  ;;  %v2620_v55 = vadd.f32 %v2549_v20, %v2197_v6  ;;  %5011 = vmatmul.mubr.msk.f32.gmra.mxu1 %vm1405_vm4, %v6236_v50 }
 0x310   : > { %v2826_v26 = vsel %vm1405_vm4, %v2758_v39, 0.0  ;;  %v4965_v40 = vpop.f32.mrf.mxu0  ;;  %v2761_v58 = vmul.f32 %v6011_v63, %v6260_v30 }
 0x311   : > { %7121 = vst [vmem:[#allocation26_spill] sm:$0xff] %v6271_v34  ;;  %2827 = vadd.xlane.f32.xlu0 %v2826_v26  ;;  %2721 = vst.msk [vmem:[#allocation3 + $0xa0] sm:$0xff] %vm1405_vm4, %v6271_v34  ;;  %v6284_v15 = vmax.f32 %v2660_v32, 0.0  ;;  %v2659_v33 = vadd.f32 %v6001_v54, %v2620_v55  ;;  %v2623_v4 = vadd.f32 %v4965_v40, %v2212_v61  ;;  %5013 = vmatprep.mubr.msk.f32.mxu1 %vm1405_vm4, %v6271_v34  ;;  %v2236_v32 = vpop.f32.mrf.mxu1 }
 0x312   : > { %v2760_v42 = vmul.f32 %v6011_v63, %v6271_v34  ;;  %2830 = vadd.xlane.f32.xlu1 %v2829_v22  ;;  %v2559_v21 = vpop.f32.mrf.mxu0  ;;  %v2835_v43 = vsel %vm1405_vm4, %v2761_v58, 0.0  ;;  %v2227_v61 = vadd.f32 %v2226_v59, %v5988_v48  ;;  %v2242_v40 = vadd.f32 %v4922_v41, %v5990_v49 }
 0x313   : > { %7122 = vst [vmem:[#allocation27_spill] sm:$0xff] %v6284_v15  ;;  %2724 = vst.msk [vmem:[#allocation3 + $0xb8] sm:$0xff] %vm1405_vm4, %v6284_v15  ;;  %v6295_v38 = vmax.f32 %v2659_v33, 0.0  ;;  %v2662_v62 = vadd.f32 %v6001_v54, %v2623_v4  ;;  %v2622_v35 = vadd.f32 %v2559_v21, %v2207_v53  ;;  %5014 = vmatmul.mubr.msk.f32.gmra.mxu1 %vm1405_vm4, %v6260_v30 }
 0x314   : > { %v2832_v25 = vsel %vm1405_vm4, %v2760_v42, 0.0  ;;  %v4968_v56 = vpop.f32.mrf.mxu0  ;;  %v2763_v44 = vmul.f32 %v6011_v63, %v6284_v15  ;;  %v2237_v42 = vadd.f32 %v2236_v32, %v5994_v51 }
 0x315   : > { %7123 = vst [vmem:[#allocation28_spill] sm:$0xff] %v6295_v38  ;;  %2833 = vadd.xlane.f32.xlu0 %v2832_v25  ;;  %2723 = vst.msk [vmem:[#allocation3 + $0xb0] sm:$0xff] %vm1405_vm4, %v6295_v38  ;;  %v6307_v3 = vmax.f32 %v2662_v62, 0.0  ;;  %v2661_v6 = vadd.f32 %v6001_v54, %v2622_v35  ;;  %v2625_v37 = vadd.f32 %v4968_v56, %v2222_v16  ;;  %5016 = vmatprep.mubr.msk.f32.mxu1 %vm1405_vm4, %v6295_v38 }
 0x316   : > { %v2762_v45 = vmul.f32 %v6011_v63, %v6295_v38  ;;  %2836 = vadd.xlane.f32.xlu1 %v2835_v43  ;;  %v2569_v52 = vpop.f32.mrf.mxu0  ;;  %v2841_v46 = vsel %vm1405_vm4, %v2763_v44, 0.0 }
 0x317   : > { %7124 = vst [vmem:[#allocation29_spill] sm:$0xff] %v6307_v3  ;;  %2726 = vst.msk [vmem:[#allocation3 + $0xc8] sm:$0xff] %vm1405_vm4, %v6307_v3  ;;  %v6317_v18 = vmax.f32 %v2661_v6, 0.0  ;;  %v2664_v1 = vadd.f32 %v6001_v54, %v2625_v37  ;;  %v2624_v24 = vadd.f32 %v2569_v52, %v2217_v23  ;;  %5017 = vmatmul.mubr.msk.f32.gmra.mxu1 %vm1405_vm4, %v6284_v15 }
 0x318   : > { %v2838_v39 = vsel %vm1405_vm4, %v2762_v45, 0.0  ;;  %v4971_v20 = vpop.f32.mrf.mxu0  ;;  %v2765_v31 = vmul.f32 %v6011_v63, %v6307_v3 }
 0x319   : > { %7125 = vst [vmem:[#allocation30_spill] sm:$0xff] %v6317_v18  ;;  %2839 = vadd.xlane.f32.xlu0 %v2838_v39  ;;  %2725 = vst.msk [vmem:[#allocation3 + $0xc0] sm:$0xff] %vm1405_vm4, %v6317_v18  ;;  %v6329_v55 = vmax.f32 %v2664_v1, 0.0  ;;  %v2663_v26 = vadd.f32 %v6001_v54, %v2624_v24  ;;  %v2627_v53 = vadd.f32 %v4971_v20, %v2232_v27  ;;  %5019 = vmatprep.mubr.msk.f32.mxu1 %vm1405_vm4, %v6317_v18 }
 0x31a   : > { %v2764_v48 = vmul.f32 %v6011_v63, %v6317_v18  ;;  %2842 = vadd.xlane.f32.xlu1 %v2841_v46  ;;  %v2579_v22 = vpop.f32.mrf.mxu0  ;;  %v2847_v49 = vsel %vm1405_vm4, %v2765_v31, 0.0 }
 0x31b   : > { %7126 = vst [vmem:[#allocation31_spill] sm:$0xff] %v6329_v55  ;;  %2728 = vst.msk [vmem:[#allocation3 + $0xd8] sm:$0xff] %vm1405_vm4, %v6329_v55  ;;  %v6339_v58 = vmax.f32 %v2663_v26, 0.0  ;;  %v2666_v59 = vadd.f32 %v6001_v54, %v2627_v53  ;;  %v2626_v33 = vadd.f32 %v2579_v22, %v2227_v61  ;;  %5020 = vmatmul.mubr.msk.f32.gmra.mxu1 %vm1405_vm4, %v6307_v3 }
 0x31c   : > { %v2844_v4 = vsel %vm1405_vm4, %v2764_v48, 0.0  ;;  %v4974_v16 = vpop.f32.mrf.mxu0  ;;  %v2767_v21 = vmul.f32 %v6011_v63, %v6329_v55 }
 0x31d   : > { %7127 = vst [vmem:[#allocation32_spill] sm:$0xff] %v6339_v58  ;;  %2845 = vadd.xlane.f32.xlu0 %v2844_v4  ;;  %2727 = vst.msk [vmem:[#allocation3 + $0xd0] sm:$0xff] %vm1405_vm4, %v6339_v58  ;;  %v6351_v62 = vmax.f32 %v2666_v59, 0.0  ;;  %v2665_v35 = vadd.f32 %v6001_v54, %v2626_v33  ;;  %v2629_v25 = vadd.f32 %v4974_v16, %v2242_v40  ;;  %5022 = vmatprep.mubr.msk.f32.mxu1 %vm1405_vm4, %v6339_v58 }
 0x31e   : > { %v2766_v51 = vmul.f32 %v6011_v63, %v6339_v58  ;;  %2848 = vadd.xlane.f32.xlu1 %v2847_v49  ;;  %v2589_v23 = vpop.f32.mrf.mxu0  ;;  %v2853_v6 = vsel %vm1405_vm4, %v2767_v21, 0.0 }
 0x31f   : > { %7128 = vst [vmem:[#allocation33_spill] sm:$0xff] %v6351_v62  ;;  %2730 = vst.msk [vmem:[#allocation3 + $0xe8] sm:$0xff] %vm1405_vm4, %v6351_v62  ;;  %v6360_v56 = vmax.f32 %v2665_v35, 0.0  ;;  %v2668_v43 = vadd.f32 %v6001_v54, %v2629_v25  ;;  %v2628_v44 = vadd.f32 %v2589_v23, %v2237_v42  ;;  %5023 = vmatmul.mubr.msk.f32.gmra.mxu1 %vm1405_vm4, %v6329_v55 }
 0x320   : > { %v2850_v41 = vsel %vm1405_vm4, %v2766_v51, 0.0  ;;  %v2769_v52 = vmul.f32 %v6011_v63, %v6351_v62 }
 0x321   : > { %7129 = vst [vmem:[#allocation34_spill] sm:$0xff] %v6360_v56  ;;  %2851 = vadd.xlane.f32.xlu0 %v2850_v41  ;;  %2729 = vst.msk [vmem:[#allocation3 + $0xe0] sm:$0xff] %vm1405_vm4, %v6360_v56  ;;  %v6369_v37 = vmax.f32 %v2668_v43, 0.0  ;;  %v2667_v45 = vadd.f32 %v6001_v54, %v2628_v44  ;;  %5025 = vmatprep.mubr.msk.f32.mxu1 %vm1405_vm4, %v6360_v56  ;;  %v2768_v27 = vmul.f32 %v6011_v63, %v6360_v56  ;;  %v3327_v44 = vld [vmem:[%s7132_s25 + $0x8] sm:$0xff] }
 0x322   : > { %2854 = vadd.xlane.f32.xlu1 %v2853_v6  ;;  %v2859_v24 = vsel %vm1405_vm4, %v2769_v52, 0.0  ;;  %3426 = vmatprep.mubr.f32.mxu0 %v3327_v44 }
 0x323   : > { %7130 = vst [vmem:[#allocation35_spill] sm:$0xff] %v6369_v37  ;;  %2732 = vst.msk [vmem:[#allocation3 + $0xf8] sm:$0xff] %vm1405_vm4, %v6369_v37  ;;  %v6380_v1 = vmax.f32 %v2667_v45, 0.0  ;;  %5026 = vmatmul.mubr.msk.f32.gmra.mxu1 %vm1405_vm4, %v6351_v62  ;;  %v2856_v54 = vsel %vm1405_vm4, %v2768_v27, 0.0  ;;  %v2771_v61 = vmul.f32 %v6011_v63, %v6369_v37 }
 0x325   : > { %7131 = vst [vmem:[#allocation36_spill] sm:$0xff] %v6380_v1  ;;  %2857 = vadd.xlane.f32.xlu0 %v2856_v54  ;;  %2731 = vst.msk [vmem:[#allocation3 + $0xf0] sm:$0xff] %vm1405_vm4, %v6380_v1  ;;  %5028 = vmatprep.mubr.msk.f32.mxu1 %vm1405_vm4, %v6380_v1  ;;  %v2770_v39 = vmul.f32 %v6011_v63, %v6380_v1  ;;  %v2865_v46 = vsel %vm1405_vm4, %v2771_v61, 0.0 }
 0x326   : > { %2860 = vadd.xlane.f32.xlu1 %v2859_v24 }
 0x327   : > { %5029 = vmatmul.mubr.msk.f32.gmra.mxu1 %vm1405_vm4, %v6369_v37  ;;  %v2862_v20 = vsel %vm1405_vm4, %v2770_v39, 0.0 }
 0x328   : > { %3501 = vmatprep.mubr.f32.mxu1 %v3327_v44 }
 0x329   : > { %2863 = vadd.xlane.f32.xlu0 %v2862_v20 }
 0x32a   : > { %2866 = vadd.xlane.f32.xlu1 %v2865_v46 }
 0x373   : > { %v6398_v31 = vpop.xlane.xlu0 %2776 }
 0x377   : > { %v6400_v32 = vpop.xlane.xlu1 %2782  ;;  %v6402_v26 = vpop.xlane.xlu0 %2773 }
 0x37b   : > { %v6404_v53 = vpop.xlane.xlu1 %2779 }
 0x37e   : > { %v6406_v48 = vpop.xlane.xlu0 %2785 }
 0x37f   : > { %v6408_v63 = vpop.xlane.xlu1 %2788  ;;  %v2868_v39 = vmax.f32 %v6402_v26, %v6406_v48 }
 0x380   : > { %v2869_v54 = vmax.f32 %v6398_v31, %v6408_v63 }
 0x382   : > { %v6410_v40 = vpop.xlane.xlu0 %2791 }
 0x383   : > { %v6412_v22 = vpop.xlane.xlu1 %2794  ;;  %v2870_v61 = vmax.f32 %v6404_v53, %v6410_v40 }
 0x384   : > { %v2871_v20 = vmax.f32 %v6400_v32, %v6412_v22 }
 0x386   : > { %v6414_v59 = vpop.xlane.xlu0 %2797 }
 0x387   : > { %v6416_v33 = vpop.xlane.xlu1 %2800  ;;  %v2872_v37 = vmax.f32 %v2868_v39, %v6414_v59 }
 0x388   : > { %v2873_v46 = vmax.f32 %v2869_v54, %v6416_v33 }
 0x38a   : > { %v6418_v4 = vpop.xlane.xlu0 %2803 }
 0x38b   : > { %v6420_v42 = vpop.xlane.xlu1 %2806  ;;  %v2874_v9 = vmax.f32 %v2870_v61, %v6418_v4 }
 0x38c   : > { %v2875_v1 = vmax.f32 %v2871_v20, %v6420_v42 }
 0x38e   : > { %v6422_v16 = vpop.xlane.xlu0 %2809 }
 0x38f   : > { %v6424_v49 = vpop.xlane.xlu1 %2812  ;;  %v2876_v56 = vmax.f32 %v2872_v37, %v6422_v16 }
 0x390   : > { %v2877_v57 = vmax.f32 %v2873_v46, %v6424_v49 }
 0x392   : > { %v6426_v21 = vpop.xlane.xlu0 %2815 }
 0x393   : > { %v6428_v35 = vpop.xlane.xlu1 %2818  ;;  %v2878_v19 = vmax.f32 %v2874_v9, %v6426_v21 }
 0x394   : > { %v2879_v54 = vmax.f32 %v2875_v1, %v6428_v35 }
 0x396   : > { %v6430_v25 = vpop.xlane.xlu0 %2821 }
 0x397   : > { %v6432_v51 = vpop.xlane.xlu1 %2824  ;;  %v2880_v61 = vmax.f32 %v2876_v56, %v6430_v25 }
 0x398   : > { %v2881_v55 = vmax.f32 %v2877_v57, %v6432_v51 }
 0x39a   : > { %v6434_v23 = vpop.xlane.xlu0 %2827 }
 0x39b   : > { %v6436_v43 = vpop.xlane.xlu1 %2830  ;;  %v2882_v20 = vmax.f32 %v2878_v19, %v6434_v23 }
 0x39c   : > { %v2883_v46 = vmax.f32 %v2879_v54, %v6436_v43 }
 0x39e   : > { %v6441_v41 = vpop.xlane.xlu0 %2833 }
 0x39f   : > { %v6443_v6 = vpop.xlane.xlu1 %2836  ;;  %v2884_v9 = vmax.f32 %v2880_v61, %v6441_v41 }
 0x3a0   : > { %v2885_v58 = vmax.f32 %v2881_v55, %v6443_v6 }
 0x3a2   : > { %v6445_v45 = vpop.xlane.xlu0 %2839 }
 0x3a3   : > { %v6447_v27 = vpop.xlane.xlu1 %2842  ;;  %v2886_v57 = vmax.f32 %v2882_v20, %v6445_v45 }
 0x3a4   : > { %v2887_v1 = vmax.f32 %v2883_v46, %v6447_v27 }
 0x3a6   : > { %v6449_v52 = vpop.xlane.xlu0 %2845 }
 0x3a7   : > { %v6453_v24 = vpop.xlane.xlu1 %2848  ;;  %v2888_v19 = vmax.f32 %v2884_v9, %v6449_v52 }
 0x3a8   : > { %v2889_v3 = vmax.f32 %v2885_v58, %v6453_v24 }
 0x3aa   : > { %v6462_v44 = vpop.xlane.xlu0 %2851  ;;  %v6468_v62 = vpop.f32.mrf.mxu1 }
 0x3ab   : > { %v6470_v17 = vpop.xlane.xlu1 %2854  ;;  %v2890_v55 = vmax.f32 %v2886_v57, %v6462_v44 }
 0x3ac   : > { %v6476_v36 = vpop.f32.mrf.mxu1  ;;  %v2891_v54 = vmax.f32 %v2887_v1, %v6470_v17 }
 0x3ae   : > { %v6478_v39 = vpop.xlane.xlu0 %2857 }
 0x3af   : > { %v6484_v14 = vpop.f32.mrf.mxu1  ;;  %v6486_v37 = vpop.xlane.xlu1 %2860  ;;  %v2892_v20 = vmax.f32 %v2888_v19, %v6478_v39 }
 0x3b0   : > { %v2893_v18 = vmax.f32 %v2889_v3, %v6486_v37 }
 0x3b1   : > { %v6492_v12 = vpop.f32.mrf.mxu1 }
 0x3b2   : > { %7133 = vst [vmem:[#allocation37_spill] sm:$0xff] %v6492_v12  ;;  %v6494_v56 = vpop.xlane.xlu0 %2863  ;;  %v2896_v5 = vmax.f32 %v2892_v20, %v2893_v18 }
 0x3b3   : > { %v6500_v0 = vpop.f32.mrf.mxu1  ;;  %v2867_v61 = vpop.xlane.xlu1 %2866  ;;  %v2894_v46 = vmax.f32 %v2890_v55, %v6494_v56 }
 0x3b4   : > { %v2895_v58 = vmax.f32 %v2891_v54, %v2867_v61 }
 0x3b5   : > { %v6504_v15 = vpop.f32.mrf.mxu1 }
 0x3b6   : > { %v2897_v38 = vmax.f32 %v2894_v46, %v2895_v58 }
 0x3b7   : > { %v6506_v11 = vpop.f32.mrf.mxu1 }
 0x3b8   : > { %v2898_v9 = vmax.f32 %v2896_v5, %v2897_v38 }
 0x3b9   : > { %v6508_v57 = vpop.f32.mrf.mxu1 }
 0x3ba   : > { %v2899_v1 = vrot.slane %v2898_v9, 4 }
 0x3bb   : > { %v6510_v30 = vpop.f32.mrf.mxu1 }
 0x3bc   : > { %v2900_v3 = vmax.f32 %v2898_v9, %v2899_v1 }
 0x3bd   : > { %v6512_v10 = vpop.f32.mrf.mxu1 }
 0x3be   : > { %v2901_v34 = vrot.slane %v2900_v3, 2 }
 0x3bf   : > { %v6514_v19 = vpop.f32.mrf.mxu1 }
 0x3c0   : > { %v2902_v55 = vmax.f32 %v2900_v3, %v2901_v34 }
 0x3c1   : > { %v6516_v54 = vpop.f32.mrf.mxu1 }
 0x3c2   : > { %v2903_v60 = vrot.slane %v2902_v55, 1 }
 0x3c3   : > { %v6518_v18 = vpop.f32.mrf.mxu1 }
 0x3c4   : > { %v6520_v20 = vmax.f32 %v2902_v55, %v2903_v60 }
 0x3c5   : > { %v6522_v5 = vpop.f32.mrf.mxu1 }
 0x3c6   : > { %v2936_v38 = vsub.f32 %v2867_v61, %v6520_v20  ;;  %v2905_v34 = vsub.f32 %v6402_v26, %v6520_v20  ;;  %v2906_v1 = vsub.f32 %v6398_v31, %v6520_v20  ;;  %v2921_v60 = vsub.f32 %v6430_v25, %v6520_v20 }
 0x3c7   : > { %v6525_v46 = vpop.f32.mrf.mxu1  ;;  %v2915_v31 = vsub.f32 %v6418_v4, %v6520_v20  ;;  %v2916_v25 = vsub.f32 %v6420_v42, %v6520_v20  ;;  %v2922_v4 = vsub.f32 %v6432_v51, %v6520_v20  ;;  %v2923_v42 = vsub.f32 %v6434_v23, %v6520_v20 }
 0x3c8   : > { %v2999_v58 = vmul.f32 1.442695, %v2936_v38  ;;  %v2937_v61 = vmul.f32 1.442695, %v2905_v34  ;;  %v2939_v50 = vmul.f32 1.442695, %v2906_v1  ;;  %v2914_v38 = vsub.f32 %v6416_v33, %v6520_v20 }
 0x3c9   : > { %v6527_v9 = vpop.f32.mrf.mxu1  ;;  %v2957_v1 = vmul.f32 1.442695, %v2915_v31  ;;  %v2959_v33 = vmul.f32 1.442695, %v2916_v25  ;;  %v2969_v25 = vmul.f32 1.442695, %v2921_v60 }
 0x3ca   : > { %5138 = vpow2.f32 %v2999_v58  ;;  %v2955_v29 = vmul.f32 1.442695, %v2914_v38  ;;  %v2924_v38 = vsub.f32 %v6436_v43, %v6520_v20  ;;  %v2971_v28 = vmul.f32 1.442695, %v2922_v4 }
 0x3cb   : > { %v6535_v3 = vpop.f32.mrf.mxu1  ;;  %5140 = vpow2.f32 %v2937_v61  ;;  %v2920_v61 = vsub.f32 %v6428_v35, %v6520_v20  ;;  %v2973_v51 = vmul.f32 1.442695, %v2923_v42 }
 0x3cc   : > { %5142 = vpow2.f32 %v2939_v50 }
 0x3cd   : > { %v6537_v55 = vpop.f32.mrf.mxu1  ;;  %5144 = vpow2.f32 %v2955_v29  ;;  %v2967_v31 = vmul.f32 1.442695, %v2920_v61 }
 0x3ce   : > { %5146 = vpow2.f32 %v2957_v1  ;;  %v2975_v1 = vmul.f32 1.442695, %v2924_v38 }
 0x3cf   : > { %v6539_v2 = vpop.f32.mrf.mxu1  ;;  %5148 = vpow2.f32 %v2959_v33 }
 0x3d0   : > { %5150 = vpow2.f32 %v2967_v31 }
 0x3d1   : > { %v6543_v26 = vpop.f32.mrf.mxu1  ;;  %5152 = vpow2.f32 %v2969_v25 }
 0x3d2   : > { %5154 = vpow2.f32 %v2971_v28  ;;  %v2918_v28 = vsub.f32 %v6424_v49, %v6520_v20 }
 0x3d3   : > { %v6549_v58 = vpop.f32.mrf.mxu1  ;;  %5156 = vpow2.f32 %v2973_v51 }
 0x3d4   : > { %5158 = vpow2.f32 %v2975_v1 }
 0x3d5   : > { %v6551_v34 = vpop.f32.mrf.mxu1 }
 0x3d7   : > { %v5139_v8 = vpop.eup %5138  ;;  %v6555_v50 = vpop.f32.mrf.mxu1 }
 0x3d8   : > { %4646 = vmatprep.subr.mxu1 %v5139_v8  ;;  %v6567_v47 = vpop.eup %5140 }
 0x3d9   : > { %v6559_v7 = vpop.f32.mrf.mxu1  ;;  %7134 = vst [vmem:[#allocation38_spill] sm:$0xff] %v6567_v47  ;;  %v6571_v29 = vpop.eup %5142  ;;  %v6575_v23 = vmul.f32 %v6567_v47, %v6476_v36  ;;  %v2919_v36 = vsub.f32 %v6426_v21, %v6520_v20  ;;  %v2934_v21 = vsub.f32 %v6486_v37, %v6520_v20 }
 0x3da   : > { %7135 = vst [vmem:[#allocation39_spill] sm:$0xff] %v6571_v29  ;;  %v6579_v43 = vmul.f32 %v6571_v29, %v6468_v62  ;;  %v6591_v42 = vpop.eup %5144  ;;  %v2935_v62 = vsub.f32 %v6494_v56, %v6520_v20  ;;  %v2963_v29 = vmul.f32 1.442695, %v2918_v28 }
 0x3db   : > { %v6565_v35 = vpop.f32.mrf.mxu1  ;;  %7136 = vst [vmem:[#allocation40_spill] sm:$0xff] %v6575_v23  ;;  %v6595_v38 = vpop.eup %5146  ;;  %v6601_v31 = vmul.f32 %v6591_v42, %v6510_v30  ;;  %v2917_v23 = vsub.f32 %v6422_v16, %v6520_v20  ;;  %v2933_v30 = vsub.f32 %v6478_v39, %v6520_v20  ;;  %v2995_v12 = vmul.f32 1.442695, %v2934_v21 }
 0x3dc   : > { %7137 = vst [vmem:[#allocation41_spill] sm:$0xff] %v6579_v43  ;;  %v6603_v51 = vpop.eup %5148  ;;  %v6609_v1 = vmul.f32 %v6595_v38, %v6516_v54  ;;  %v2965_v43 = vmul.f32 1.442695, %v2919_v36  ;;  %v2997_v47 = vmul.f32 1.442695, %v2935_v62  ;;  %v2932_v54 = vsub.f32 %v6470_v17, %v6520_v20 }
 0x3dd   : > { %v6569_v13 = vpop.f32.mrf.mxu1  ;;  %v6615_v49 = vmul.f32 %v6603_v51, %v6514_v19  ;;  %v5151_v37 = vpop.eup %5150  ;;  %v2931_v39 = vsub.f32 %v6462_v44, %v6520_v20  ;;  %v2993_v36 = vmul.f32 1.442695, %v2933_v30 }
 0x3de   : > { %5160 = vpow2.f32 %v2965_v43  ;;  %v3345_v16 = vmul.f32 %v5151_v37, %v6525_v46  ;;  %4647 = vmatpush3.msra.mxu1 %v5151_v37  ;;  %v2991_v44 = vmul.f32 1.442695, %v2932_v54  ;;  %v2909_v54 = vsub.f32 %v6406_v48, %v6520_v20 }
 0x3df   : > { %v6581_v61 = vpop.f32.mrf.mxu1  ;;  %5162 = vpow2.f32 %v2997_v47  ;;  %v2930_v47 = vsub.f32 %v6453_v24, %v6520_v20  ;;  %v2989_v28 = vmul.f32 1.442695, %v2931_v39  ;;  %v2907_v48 = vsub.f32 %v6404_v53, %v6520_v20 }
 0x3e0   : > { %5164 = vpow2.f32 %v2963_v29  ;;  %v2929_v29 = vsub.f32 %v6449_v52, %v6520_v20  ;;  %v2910_v52 = vsub.f32 %v6408_v63, %v6520_v20  ;;  %v2908_v63 = vsub.f32 %v6400_v32, %v6520_v20 }
 0x3e1   : > { %v6583_v60 = vpop.f32.mrf.mxu1  ;;  %5166 = vpow2.f32 %v2995_v12  ;;  %v2912_v12 = vsub.f32 %v6412_v22, %v6520_v20  ;;  %v2987_v21 = vmul.f32 1.442695, %v2930_v47  ;;  %v2925_v22 = vsub.f32 %v6441_v41, %v6520_v20 }
 0x3e2   : > { %v2985_v30 = vmul.f32 1.442695, %v2929_v29 }
 0x3e3   : > { %v6585_v33 = vpop.f32.mrf.mxu1  ;;  %v2951_v37 = vmul.f32 1.442695, %v2912_v12  ;;  %v2977_v47 = vmul.f32 1.442695, %v2925_v22 }
 0x3e5   : > { %v6589_v4 = vpop.f32.mrf.mxu1 }
 0x3e7   : > { %v5030_v25 = vpop.f32.mrf.mxu1 }
 0x3e8   : > { %v3361_v56 = vmul.f32 %v5139_v8, %v5030_v25  ;;  %v6621_v8 = vpop.eup %5152  ;;  %v2961_v25 = vmul.f32 1.442695, %v2917_v23  ;;  %v2913_v23 = vsub.f32 %v6414_v59, %v6520_v20  ;;  %v2928_v59 = vsub.f32 %v6447_v27, %v6520_v20 }
 0x3e9   : > { %v6624_v19 = vpop.eup %5154  ;;  %v6630_v62 = vmul.f32 %v6621_v8, %v6537_v55  ;;  %v2911_v27 = vsub.f32 %v6410_v40, %v6520_v20 }
 0x3ea   : > { %4608 = vmatprep.subr.mxu0 %v3361_v56  ;;  %v6632_v17 = vpop.eup %5156  ;;  %v6638_v46 = vmul.f32 %v6624_v19, %v6535_v3  ;;  %5168 = vpow2.f32 %v2961_v25  ;;  %v2953_v24 = vmul.f32 1.442695, %v2913_v23  ;;  %v2983_v56 = vmul.f32 1.442695, %v2928_v59  ;;  %v3317_v25 = vpop.f32.mrf.mxu1 }
 0x3eb   : > { %4609 = vmatpush3.msra.mxu0 %v3345_v16  ;;  %v6640_v43 = vpop.eup %5158  ;;  %v6646_v55 = vmul.f32 %v6632_v17, %v6543_v26  ;;  %5170 = vpow2.f32 %v2993_v36  ;;  %v2927_v26 = vsub.f32 %v6445_v45, %v6520_v20  ;;  %v2949_v40 = vmul.f32 1.442695, %v2911_v27 }
 0x3ec   : > { %v6652_v3 = vmul.f32 %v6640_v43, %v6539_v2  ;;  %5172 = vpow2.f32 %v2991_v44  ;;  %v2926_v2 = vsub.f32 %v6443_v6, %v6520_v20  ;;  %v5161_v16 = vpop.eup %5160  ;;  %v2947_v36 = vmul.f32 1.442695, %v2910_v52 }
 0x3ed   : > { %5174 = vpow2.f32 %v2989_v28  ;;  %v2981_v45 = vmul.f32 1.442695, %v2927_v26  ;;  %v5163_v39 = vpop.eup %5162  ;;  %v2945_v59 = vmul.f32 1.442695, %v2909_v54  ;;  %v3344_v29 = vmul.f32 %v5161_v16, %v6527_v9  ;;  %v3522_v54 = vld [vmem:[%s5387_s3 + $0x10] sm:$0xff] }
 0x3ee   : > { %5176 = vpow2.f32 %v2953_v24  ;;  %v2979_v6 = vmul.f32 1.442695, %v2926_v2  ;;  %v5165_v23 = vpop.eup %5164  ;;  %4648 = vmatprep.subr.mxu1 %v5163_v39  ;;  %v3360_v41 = vmul.f32 %v5163_v39, %v3317_v25  ;;  %v2943_v24 = vmul.f32 1.442695, %v2908_v63  ;;  %v3521_v25 = vld [vmem:[%s5387_s3 + $0x8] sm:$0xff]  ;;  %v3516_v39 = vld [vmem:[%s5382_s7] sm:$0xff] }
 0x3ef   : > { %5178 = vpow2.f32 %v2987_v21  ;;  %v5167_v44 = vpop.eup %5166  ;;  %4649 = vmatpush3.msra.mxu1 %v5161_v16  ;;  %v3343_v26 = vmul.f32 %v5165_v23, %v6518_v18  ;;  %v2941_v9 = vmul.f32 1.442695, %v2907_v48  ;;  %v3517_v16 = vld [vmem:[%s5382_s7 + $0x8] sm:$0xff] }
 0x3f0   : > { %5180 = vpow2.f32 %v2983_v56  ;;  %4650 = vmatprep.subr.mxu1 %v5167_v44  ;;  %v3359_v32 = vmul.f32 %v5167_v44, %v6585_v33  ;;  %4610 = vmatprep.subr.mxu0 %v3360_v41  ;;  %v5207_v63 = vld [vmem:[#allocation2 + $0x8] sm:$0xff] }
 0x3f1   : > { %5182 = vpow2.f32 %v2985_v30  ;;  %4651 = vmatpush3.msra.mxu1 %v5165_v23  ;;  %4611 = vmatpush3.msra.mxu0 %v3344_v29 }
 0x3f2   : > { %5184 = vpow2.f32 %v2951_v37  ;;  %4612 = vmatprep.subr.mxu0 %v3359_v32 }
 0x3f3   : > { %5186 = vpow2.f32 %v2981_v45  ;;  %4613 = vmatpush3.msra.mxu0 %v3343_v26 }
 0x3f4   : > { %5188 = vpow2.f32 %v2949_v40  ;;  %v3518_v40 = vld [vmem:[%s5382_s7 + $0x10] sm:$0xff] }
 0x3f5   : > { %5190 = vpow2.f32 %v2979_v6  ;;  %v3520_v6 = vld [vmem:[%s5387_s3] sm:$0xff] }
 0x3f6   : > { %5192 = vpow2.f32 %v2947_v36 }
 0x3f7   : > { %v5169_v28 = vpop.eup %5168  ;;  %5194 = vpow2.f32 %v2977_v47 }
 0x3f8   : > { %v5171_v12 = vpop.eup %5170  ;;  %5196 = vpow2.f32 %v2945_v59  ;;  %v3342_v21 = vmul.f32 %v5169_v28, %v6522_v5 }
 0x3f9   : > { %4652 = vmatprep.subr.mxu1 %v5171_v12  ;;  %v3358_v53 = vmul.f32 %v5171_v12, %v6589_v4  ;;  %v5173_v20 = vpop.eup %5172  ;;  %5198 = vpow2.f32 %v2943_v24 }
 0x3fa   : > { %4653 = vmatpush3.msra.mxu1 %v5169_v28  ;;  %v3357_v33 = vmul.f32 %v5173_v20, %v6581_v61  ;;  %v5175_v27 = vpop.eup %5174  ;;  %5200 = vpow2.f32 %v2941_v9 }
 0x3fb   : > { %4654 = vmatprep.subr.mxu1 %v5173_v20  ;;  %4614 = vmatprep.subr.mxu0 %v3358_v53  ;;  %v5177_v18 = vpop.eup %5176  ;;  %v3356_v4 = vmul.f32 %v5175_v27, %v6583_v60 }
 0x3fc   : > { %4655 = vmatpush3.msra.mxu1 %v6603_v51  ;;  %4615 = vmatpush3.msra.mxu0 %v3342_v21  ;;  %v5179_v56 = vpop.eup %5178 }
 0x3fd   : > { %4656 = vmatprep.subr.mxu1 %v5175_v27  ;;  %4616 = vmatprep.subr.mxu0 %v3357_v33  ;;  %v5181_v5 = vpop.eup %5180  ;;  %v3355_v61 = vmul.f32 %v5179_v56, %v6565_v35  ;;  %v4374_v27 = vld [vmem:[%s835_s22] ss:$0 sm:$0xff] }
 0x3fe   : > { %4657 = vmatpush3.msra.mxu1 %v6595_v38  ;;  %4617 = vmatpush3.msra.mxu0 %v6615_v49  ;;  %v5183_v2 = vpop.eup %5182  ;;  %v3338_v38 = vmul.f32 %v5177_v18, %v6512_v10  ;;  %v3353_v35 = vmul.f32 %v5181_v5, %v6555_v50 }
 0x3ff   : > { %4658 = vmatprep.subr.mxu1 %v5179_v56  ;;  %4618 = vmatprep.subr.mxu0 %v3356_v4  ;;  %v5185_v51 = vpop.eup %5184  ;;  %v3354_v60 = vmul.f32 %v5183_v2, %v6569_v13 }
 0x400   : > { %4659 = vmatpush3.msra.mxu1 %v6591_v42  ;;  %4619 = vmatpush3.msra.mxu0 %v6609_v1  ;;  %v5187_v30 = vpop.eup %5186  ;;  %v3337_v42 = vmul.f32 %v5185_v51, %v6506_v11 }
 0x401   : > { %4660 = vmatprep.subr.mxu1 %v5183_v2  ;;  %4620 = vmatprep.subr.mxu0 %v3355_v61  ;;  %v5189_v49 = vpop.eup %5188  ;;  %v3352_v13 = vmul.f32 %v5187_v30, %v6559_v7 }
 0x402   : > { %4661 = vmatpush3.msra.mxu1 %v5177_v18  ;;  %4621 = vmatpush3.msra.mxu0 %v6601_v31  ;;  %v5191_v52 = vpop.eup %5190  ;;  %v3336_v10 = vmul.f32 %v5189_v49, %v6508_v57 }
 0x403   : > { %4662 = vmatprep.subr.mxu1 %v5181_v5  ;;  %4622 = vmatprep.subr.mxu0 %v3354_v60  ;;  %v5193_v1 = vpop.eup %5192  ;;  %v3351_v50 = vmul.f32 %v5191_v52, %v6549_v58 }
 0x404   : > { %4663 = vmatpush3.msra.mxu1 %v5185_v51  ;;  %4623 = vmatpush3.msra.mxu0 %v3338_v38  ;;  %v5195_v37 = vpop.eup %5194  ;;  %v3335_v22 = vmul.f32 %v5193_v1, %v6500_v0  ;;  %v7138_v0 = vld [vmem:[#allocation37_spill] sm:$0xff] }
 0x405   : > { %4664 = vmatprep.subr.mxu1 %v5187_v30  ;;  %4624 = vmatprep.subr.mxu0 %v3353_v35  ;;  %v5197_v31 = vpop.eup %5196  ;;  %v3350_v45 = vmul.f32 %v5195_v37, %v6551_v34 }
 0x406   : > { %4665 = vmatpush3.msra.mxu1 %v5189_v49  ;;  %4625 = vmatpush3.msra.mxu0 %v3337_v42  ;;  %v5199_v11 = vpop.eup %5198  ;;  %v3334_v7 = vmul.f32 %v5197_v31, %v6504_v15  ;;  %v7139_v15 = vld [vmem:[#allocation39_spill] sm:$0xff] }
 0x407   : > { %4666 = vmatprep.subr.mxu1 %v5191_v52  ;;  %4626 = vmatprep.subr.mxu0 %v3352_v13  ;;  %v5201_v57 = vpop.eup %5200  ;;  %v3333_v58 = vmul.f32 %v5199_v11, %v6484_v14  ;;  %v3326_v14 = vld [vmem:[%s7132_s25] sm:$0xff] }
 0x408   : > { %4667 = vmatpush3.msra.mxu1 %v5193_v1  ;;  %4627 = vmatpush3.msra.mxu0 %v3336_v10  ;;  %v3332_v34 = vmul.f32 %v5201_v57, %v7138_v0 }
 0x409   : > { %4668 = vmatprep.subr.mxu1 %v5195_v37  ;;  %4628 = vmatprep.subr.mxu0 %v3351_v50 }
 0x40a   : > { %4669 = vmatpush3.msra.mxu1 %v5197_v31  ;;  %4629 = vmatpush3.msra.mxu0 %v3335_v22 }
 0x40b   : > { %4670 = vmatprep.subr.mxu1 %v6640_v43  ;;  %4630 = vmatprep.subr.mxu0 %v3350_v45  ;;  %v7141_v43 = vld [vmem:[#allocation41_spill] sm:$0xff] }
 0x40c   : > { %4671 = vmatpush3.msra.mxu1 %v5199_v11  ;;  %4631 = vmatpush3.msra.mxu0 %v3334_v7 }
 0x40d   : > { %4672 = vmatprep.subr.mxu1 %v6632_v17  ;;  %4632 = vmatprep.subr.mxu0 %v6652_v3  ;;  %v3329_v17 = vld [vmem:[%s7132_s25 + $0x18] sm:$0xff] }
 0x40e   : > { %4673 = vmatpush3.msra.mxu1 %v5201_v57  ;;  %4633 = vmatpush3.msra.mxu0 %v3333_v58  ;;  %v3519_v3 = vld [vmem:[%s5382_s7 + $0x18] sm:$0xff] }
 0x40f   : > { %4674 = vmatprep.subr.mxu1 %v6624_v19  ;;  %4634 = vmatprep.subr.mxu0 %v6646_v55  ;;  %v7140_v19 = vld [vmem:[#allocation38_spill] sm:$0xff]  ;;  %v7142_v55 = vld [vmem:[#allocation40_spill] sm:$0xff] }
 0x410   : > { %4675 = vmatpush3.msra.mxu1 %v7139_v15  ;;  %4635 = vmatpush3.msra.mxu0 %v3332_v34 }
 0x411   : > { %4676 = vmatprep.subr.mxu1 %v6621_v8  ;;  %4636 = vmatprep.subr.mxu0 %v6638_v46  ;;  %v3328_v8 = vld [vmem:[%s7132_s25 + $0x10] sm:$0xff]  ;;  %v5206_v46 = vld [vmem:[#allocation2] sm:$0xff] }
 0x412   : > { %4677 = vmatpush3.msra.mxu1 %v7140_v19  ;;  %4637 = vmatpush3.msra.mxu0 %v7141_v43 }
 0x413   : > { %4638 = vmatprep.subr.mxu0 %v6630_v62  ;;  %3502 = vmatmul.mubr.f32.vlgmr.msra.gmra.mxu1 %v3326_v14  ;;  %v3523_v62 = vld [vmem:[%s5387_s3 + $0x18] sm:$0xff] }
 0x414   : > { %4639 = vmatpush3.msra.mxu0 %v7142_v55  ;;  %3506 = vmatprep.mubr.f32.mxu1 %v3329_v17 }
 0x415   : > { %3427 = vmatmul.mubr.f32.vlgmr.msra.gmra.mxu0 %v3326_v14  ;;  %5031 = vmatprep.subr.mxu0 %v3523_v62 }
 0x416   : > { %3431 = vmatprep.mubr.f32.mxu0 %v3329_v17  ;;  %5042 = vmatprep.subr.mxu1 %v3519_v3 }
 0x417   : > { %3507 = vmatmul.mubr.f32.gmra.mxu1 %v3328_v8  ;;  %5032 = vmatpush3.msra.mxu0 %v3523_v62 }
 0x418   : > { %5050 = vmatprep.mubr.msk.f32.mxu1 %vm1405_vm4, %v5206_v46  ;;  %5043 = vmatpush3.msra.mxu1 %v3519_v3 }
 0x419   : > { %3432 = vmatmul.mubr.f32.gmra.mxu0 %v3328_v8  ;;  %5033 = vmatprep.subr.mxu0 %v3522_v54 }
 0x41a   : > { %5044 = vmatprep.subr.mxu1 %v3518_v40  ;;  %5034 = vmatpush3.msra.mxu0 %v3522_v54 }
 0x41b   : > { %5045 = vmatpush3.msra.mxu1 %v3518_v40  ;;  %5035 = vmatprep.subr.mxu0 %v3521_v25 }
 0x41c   : > { %5046 = vmatprep.subr.mxu1 %v3517_v16  ;;  %5036 = vmatpush3.msra.mxu0 %v3521_v25 }
 0x41d   : > { %5047 = vmatpush3.msra.mxu1 %v3517_v16  ;;  %5037 = vmatprep.subr.mxu0 %v3520_v6 }
 0x41e   : > { %5048 = vmatprep.subr.mxu1 %v3516_v39  ;;  %5038 = vmatpush3.msra.mxu0 %v3520_v6 }
 0x41f   : > { %5049 = vmatpush3.msra.mxu1 %v3516_v39 }
 0x420   : > { %5051 = vmatmul.mubr.msk.f32.vlgmr.msra.gmra.mxu1 %vm1405_vm4, %v5207_v63 }
 0x4d3   : > { %v4678_v36 = vpop.f32.mrf.mxu1 }
 0x4d5   : > { %v4679_v23 = vpop.f32.mrf.mxu1  ;;  %v4640_v44 = vpop.f32.mrf.mxu0 }
 0x4d6   : > { %v4680_v47 = vadd.f32 %v4679_v23, %v4678_v36 }
 0x4d7   : > { %v4681_v41 = vpop.f32.mrf.mxu1  ;;  %v4641_v29 = vpop.f32.mrf.mxu0 }
 0x4d8   : > { %5202 = vrcp.f32 %v4680_v47  ;;  %v4642_v32 = vadd.f32 %v4641_v29, %v4640_v44 }
 0x4d9   : > { %v4682_v48 = vpop.f32.mrf.mxu1  ;;  %v4643_v28 = vpop.f32.mrf.mxu0 }
 0x4da   : > { %v4683_v59 = vadd.f32 %v4682_v48, %v4681_v41 }
 0x4db   : > { %v4644_v12 = vpop.f32.mrf.mxu0 }
 0x4dc   : > { %5204 = vrcp.f32 %v4683_v59  ;;  %v4645_v53 = vadd.f32 %v4644_v12, %v4643_v28 }
 0x4e0   : > { %v5052_v21 = vpop.f32.mrf.mxu1 }
 0x4e2   : > { %v3671_v56 = vpop.f32.mrf.mxu1 }
 0x4e5   : > { %v5203_v24 = vpop.eup %5202 }
 0x4e6   : > { %v3513_v26 = vmul.f32 %v5203_v24, %v4642_v32 }
 0x4e8   : > { %5039 = vmatprep.mubr.msk.f32.mxu0 %vm1405_vm4, %v3513_v26 }
 0x4e9   : > { %v5205_v20 = vpop.eup %5204 }
 0x4ea   : > { %v3515_v9 = vmul.f32 %v5205_v20, %v4645_v53 }
 0x4ec   : > { %5040 = vmatmul.mubr.msk.f32.vlgmr.msra.gmra.mxu0 %vm1405_vm4, %v3515_v9 }
 0x5ac   : > { %v5041_v33 = vpop.f32.mrf.mxu0 }
 0x5ad   : > { %v3677_v18 = vadd.f32 %v5052_v21, %v5041_v33 }
 0x5ae   : > { %v3596_v4 = vpop.f32.mrf.mxu0 }
 0x5af   : > { %v3688_v5 = vadd.f32 %v4374_v27, %v3677_v18  ;;  %v3672_v61 = vadd.f32 %v3671_v56, %v3596_v4 }
 0x5b1   : > { %v3690_v2 = vmax.f32 %v3688_v5, 0.0  ;;  %v3687_v51 = vadd.f32 %v4374_v27, %v3672_v61  ;;  %3696 = sbr.rel (%p4375_p5) target bundleno = 1702 (0x6a6), region = 116 }
 0x5b3   : > { %3692 = vst.msk [vmem:[#allocation2 + $0x8] sm:$0xff] %vm1405_vm4, %v3690_v2  ;;  %v3689_v60 = vmax.f32 %v3687_v51, 0.0 }
 0x5b5   : > { %3691 = vst.msk [vmem:[#allocation2] sm:$0xff] %vm1405_vm4, %v3689_v60 }
 0x5b6   : > { %v3700_v30 = vld [vmem:[%s7026_s18 + $0x18] sm:$0xff]  ;;  %v3699_v49 = vld [vmem:[%s7026_s18 + $0x10] sm:$0xff]  ;;  %5061 = vmatprep.mubr.msk.f32.mxu0 %vm1405_vm4, %v3689_v60  ;;  %v7143_v35 = vld [vmem:[#allocation20_spill] sm:$0xff]  ;;  %vm3789_vm6 = vcmask 64512   ;;  %vm4028_vm7 = vcmask 31744  }
 0x5b7   : > { %v3795_v38 = vld [vmem:[%s7028_s20 + $0x18] sm:$0xff]  ;;  %5093 = vmatprep.mubr.msk.f32.mxu1 %vm1405_vm4, %v7143_v35  ;;  %5053 = vmatprep.subr.mxu0 %v3700_v30  ;;  %v3794_v52 = vld [vmem:[%s7028_s20 + $0x10] sm:$0xff]  ;;  %v3698_v42 = vld [vmem:[%s7026_s18 + $0x8] sm:$0xff] }
 0x5b8   : > { %5122 = vmatprep.subr.mxu1 %v3795_v38  ;;  %5054 = vmatpush3.msra.mxu0 %v3700_v30  ;;  %v3793_v1 = vld [vmem:[%s7028_s20 + $0x8] sm:$0xff]  ;;  %v3697_v13 = vld [vmem:[%s7026_s18] sm:$0xff]  ;;  %v7145_v31 = vld [vmem:[#allocation22_spill] sm:$0xff] }
 0x5b9   : > { %5126 = vmatpush3.msra.mxu1 %v3795_v38  ;;  %5055 = vmatprep.subr.mxu0 %v3699_v49  ;;  %v3792_v37 = vld [vmem:[%s7028_s20] sm:$0xff]  ;;  %v7146_v50 = vld [vmem:[#allocation6_spill] sm:$0xff]  ;;  %v7147_v22 = vld [vmem:[#allocation21_spill] sm:$0xff] }
 0x5ba   : > { %5123 = vmatprep.subr.mxu1 %v3794_v52  ;;  %5056 = vmatpush3.msra.mxu0 %v3699_v49  ;;  %v7144_v10 = vld [vmem:[#allocation19_spill] sm:$0xff]  ;;  %v7148_v11 = vld [vmem:[#allocation24_spill] sm:$0xff]  ;;  %v7149_v45 = vld [vmem:[#allocation5_spill] sm:$0xff] }
 0x5bb   : > { %5127 = vmatpush3.msra.mxu1 %v3794_v52  ;;  %5057 = vmatprep.subr.mxu0 %v3698_v42  ;;  %v7150_v7 = vld [vmem:[#allocation23_spill] sm:$0xff]  ;;  %v7151_v57 = vld [vmem:[#allocation8_spill] sm:$0xff]  ;;  %v7152_v58 = vld [vmem:[#allocation26_spill] sm:$0xff] }
 0x5bc   : > { %5124 = vmatprep.subr.mxu1 %v3793_v1  ;;  %5058 = vmatpush3.msra.mxu0 %v3698_v42  ;;  %v7153_v0 = vld [vmem:[#allocation7_spill] sm:$0xff]  ;;  %v7154_v34 = vld [vmem:[#allocation25_spill] sm:$0xff]  ;;  %v7155_v15 = vld [vmem:[#allocation10_spill] sm:$0xff] }
 0x5bd   : > { %5128 = vmatpush3.msra.mxu1 %v3793_v1  ;;  %5059 = vmatprep.subr.mxu0 %v3697_v13  ;;  %v7156_v14 = vld [vmem:[#allocation28_spill] sm:$0xff]  ;;  %v7157_v17 = vld [vmem:[#allocation9_spill] sm:$0xff]  ;;  %v7158_v19 = vld [vmem:[#allocation27_spill] sm:$0xff] }
 0x5be   : > { %5125 = vmatprep.subr.mxu1 %v3792_v37  ;;  %5060 = vmatpush3.msra.mxu0 %v3697_v13  ;;  %v7159_v43 = vld [vmem:[#allocation12_spill] sm:$0xff]  ;;  %v7160_v55 = vld [vmem:[#allocation30_spill] sm:$0xff]  ;;  %v7161_v8 = vld [vmem:[#allocation11_spill] sm:$0xff] }
 0x5bf   : > { %5129 = vmatpush3.msra.mxu1 %v3792_v37  ;;  %5062 = vmatmul.mubr.msk.f32.vlgmr.msra.gmra.mxu0 %vm1405_vm4, %v3690_v2  ;;  %v7162_v46 = vld [vmem:[#allocation29_spill] sm:$0xff]  ;;  %v7163_v62 = vld [vmem:[#allocation14_spill] sm:$0xff]  ;;  %v7164_v3 = vld [vmem:[#allocation32_spill] sm:$0xff] }
 0x5c0   : > { %5064 = vmatprep.subr.mxu0 %v3795_v38  ;;  %5094 = vmatmul.mubr.msk.f32.vlgmr.msra.gmra.mxu1 %vm1405_vm4, %v7144_v10  ;;  %v7165_v54 = vld [vmem:[#allocation13_spill] sm:$0xff]  ;;  %v7166_v40 = vld [vmem:[#allocation31_spill] sm:$0xff]  ;;  %v7167_v25 = vld [vmem:[#allocation16_spill] sm:$0xff] }
 0x5c1   : > { %5065 = vmatpush3.msra.mxu0 %v3795_v38  ;;  %5096 = vmatprep.mubr.msk.f32.mxu1 %vm1405_vm4, %v7145_v31  ;;  %v7168_v16 = vld [vmem:[#allocation34_spill] sm:$0xff]  ;;  %v7169_v6 = vld [vmem:[#allocation15_spill] sm:$0xff]  ;;  %v7170_v39 = vld [vmem:[#allocation33_spill] sm:$0xff] }
 0x5c2   : > { %5066 = vmatprep.subr.mxu0 %v3794_v52  ;;  %5072 = vmatprep.mubr.msk.f32.mxu0 %vm1405_vm4, %v7146_v50  ;;  %v7171_v63 = vld [vmem:[#allocation18_spill] sm:$0xff]  ;;  %v7172_v36 = vld [vmem:[#allocation36_spill] sm:$0xff]  ;;  %v7173_v23 = vld [vmem:[#allocation17_spill] sm:$0xff] }
 0x5c3   : > { %5067 = vmatpush3.msra.mxu0 %v3794_v52  ;;  %v7174_v47 = vld [vmem:[#allocation35_spill] sm:$0xff] }
 0x5c4   : > { %5068 = vmatprep.subr.mxu0 %v3793_v1  ;;  %5097 = vmatmul.mubr.msk.f32.gmra.mxu1 %vm1405_vm4, %v7147_v22  ;;  %v4376_v41 = vld [vmem:[%s7027_s19] ss:$0 sm:$0xff] }
 0x5c5   : > { %5069 = vmatpush3.msra.mxu0 %v3793_v1  ;;  %5099 = vmatprep.mubr.msk.f32.mxu1 %vm1405_vm4, %v7148_v11  ;;  %v6837_v44 = vld [vmem:[%s7029_s21] ss:$0 sm:$0xff] }
 0x5c6   : > { %5070 = vmatprep.subr.mxu0 %v3792_v37 }
 0x5c7   : > { %5071 = vmatpush3.msra.mxu0 %v3792_v37 }
 0x5c8   : > { %5073 = vmatmul.mubr.msk.f32.vlgmr.msra.gmra.mxu0 %vm1405_vm4, %v7149_v45  ;;  %5100 = vmatmul.mubr.msk.f32.gmra.mxu1 %vm1405_vm4, %v7150_v7 }
 0x5c9   : > { %5075 = vmatprep.mubr.msk.f32.mxu0 %vm1405_vm4, %v7151_v57  ;;  %5102 = vmatprep.mubr.msk.f32.mxu1 %vm1405_vm4, %v7152_v58 }
 0x5cc   : > { %5076 = vmatmul.mubr.msk.f32.gmra.mxu0 %vm1405_vm4, %v7153_v0  ;;  %5103 = vmatmul.mubr.msk.f32.gmra.mxu1 %vm1405_vm4, %v7154_v34 }
 0x5cd   : > { %5078 = vmatprep.mubr.msk.f32.mxu0 %vm1405_vm4, %v7155_v15  ;;  %5105 = vmatprep.mubr.msk.f32.mxu1 %vm1405_vm4, %v7156_v14 }
 0x5d0   : > { %5079 = vmatmul.mubr.msk.f32.gmra.mxu0 %vm1405_vm4, %v7157_v17  ;;  %5106 = vmatmul.mubr.msk.f32.gmra.mxu1 %vm1405_vm4, %v7158_v19 }
 0x5d1   : > { %5081 = vmatprep.mubr.msk.f32.mxu0 %vm1405_vm4, %v7159_v43  ;;  %5108 = vmatprep.mubr.msk.f32.mxu1 %vm1405_vm4, %v7160_v55 }
 0x5d4   : > { %5082 = vmatmul.mubr.msk.f32.gmra.mxu0 %vm1405_vm4, %v7161_v8  ;;  %5109 = vmatmul.mubr.msk.f32.gmra.mxu1 %vm1405_vm4, %v7162_v46 }
 0x5d5   : > { %5084 = vmatprep.mubr.msk.f32.mxu0 %vm1405_vm4, %v7163_v62  ;;  %5111 = vmatprep.mubr.msk.f32.mxu1 %vm1405_vm4, %v7164_v3 }
 0x5d8   : > { %5085 = vmatmul.mubr.msk.f32.gmra.mxu0 %vm1405_vm4, %v7165_v54  ;;  %5112 = vmatmul.mubr.msk.f32.gmra.mxu1 %vm1405_vm4, %v7166_v40 }
 0x5d9   : > { %5087 = vmatprep.mubr.msk.f32.mxu0 %vm1405_vm4, %v7167_v25  ;;  %5114 = vmatprep.mubr.msk.f32.mxu1 %vm1405_vm4, %v7168_v16 }
 0x5dc   : > { %5088 = vmatmul.mubr.msk.f32.gmra.mxu0 %vm1405_vm4, %v7169_v6  ;;  %5115 = vmatmul.mubr.msk.f32.gmra.mxu1 %vm1405_vm4, %v7170_v39 }
 0x5dd   : > { %5090 = vmatprep.mubr.msk.f32.mxu0 %vm1405_vm4, %v7171_v63  ;;  %5117 = vmatprep.mubr.msk.f32.mxu1 %vm1405_vm4, %v7172_v36 }
 0x5e0   : > { %5091 = vmatmul.mubr.msk.f32.gmra.mxu0 %vm1405_vm4, %v7173_v23  ;;  %5118 = vmatmul.mubr.msk.f32.gmra.mxu1 %vm1405_vm4, %v7174_v47 }
 0x67f   : > { %v5063_v48 = vpop.f32.mrf.mxu0 }
 0x680   : > { %v3786_v59 = vadd.f32 %v5063_v48, %v4376_v41  ;;  %v5095_v29 = vpop.f32.mrf.mxu1 }
 0x681   : > { %v3945_v28 = vadd.f32 %v5095_v29, %v6837_v44  ;;  %v3780_v32 = vpop.f32.mrf.mxu0 }
 0x682   : > { %3791 = vst.msk [vmem:[%s7175_s29 + $0x8] sm:$0xff] %vm3789_vm6, %v3786_v59  ;;  %v3781_v12 = vadd.f32 %v4376_v41, %v3780_v32  ;;  %v3939_v24 = vpop.f32.mrf.mxu1 }
 0x683   : > { %4044 = vst.msk [vmem:[%s7176_s11 + $0x78] sm:$0xff] %vm4028_vm7, %v3945_v28  ;;  %v3940_v26 = vadd.f32 %v6837_v44, %v3939_v24 }
 0x684   : > { %3790 = vst.msk [vmem:[%s7175_s29] sm:$0xff] %vm3789_vm6, %v3781_v12  ;;  %v5098_v53 = vpop.f32.mrf.mxu1 }
 0x685   : > { %4043 = vst.msk [vmem:[%s7176_s11 + $0x70] sm:$0xff] %vm4028_vm7, %v3940_v26  ;;  %v3955_v20 = vadd.f32 %v5098_v53, %v6837_v44 }
 0x686   : > { %v3949_v9 = vpop.f32.mrf.mxu1 }
 0x687   : > { %4046 = vst.msk [vmem:[%s7176_s11 + $0x88] sm:$0xff] %vm4028_vm7, %v3955_v20  ;;  %v3950_v21 = vadd.f32 %v6837_v44, %v3949_v9 }
 0x688   : > { %v5074_v33 = vpop.f32.mrf.mxu0  ;;  %v5101_v18 = vpop.f32.mrf.mxu1 }
 0x689   : > { %v3875_v27 = vadd.f32 %v5074_v33, %v6837_v44  ;;  %4045 = vst.msk [vmem:[%s7176_s11 + $0x80] sm:$0xff] %vm4028_vm7, %v3950_v21  ;;  %v3965_v4 = vadd.f32 %v5101_v18, %v6837_v44 }
 0x68a   : > { %v3869_v56 = vpop.f32.mrf.mxu0  ;;  %v3959_v61 = vpop.f32.mrf.mxu1 }
 0x68b   : > { %4030 = vst.msk [vmem:[%s7176_s11 + $0x8] sm:$0xff] %vm4028_vm7, %v3875_v27  ;;  %v3870_v5 = vadd.f32 %v6837_v44, %v3869_v56  ;;  %4048 = vst.msk [vmem:[%s7176_s11 + $0x98] sm:$0xff] %vm4028_vm7, %v3965_v4  ;;  %v3960_v2 = vadd.f32 %v6837_v44, %v3959_v61 }
 0x68c   : > { %v5077_v51 = vpop.f32.mrf.mxu0  ;;  %v5104_v30 = vpop.f32.mrf.mxu1 }
 0x68d   : > { %4029 = vst.msk [vmem:[%s7176_s11] sm:$0xff] %vm4028_vm7, %v3870_v5  ;;  %v3885_v60 = vadd.f32 %v5077_v51, %v6837_v44  ;;  %4047 = vst.msk [vmem:[%s7176_s11 + $0x90] sm:$0xff] %vm4028_vm7, %v3960_v2  ;;  %v3975_v38 = vadd.f32 %v5104_v30, %v6837_v44 }
 0x68e   : > { %v3879_v49 = vpop.f32.mrf.mxu0  ;;  %v3969_v52 = vpop.f32.mrf.mxu1 }
 0x68f   : > { %4032 = vst.msk [vmem:[%s7176_s11 + $0x18] sm:$0xff] %vm4028_vm7, %v3885_v60  ;;  %v3880_v35 = vadd.f32 %v6837_v44, %v3879_v49  ;;  %4050 = vst.msk [vmem:[%s7176_s11 + $0xa8] sm:$0xff] %vm4028_vm7, %v3975_v38  ;;  %v3970_v42 = vadd.f32 %v6837_v44, %v3969_v52 }
 0x690   : > { %v5080_v1 = vpop.f32.mrf.mxu0  ;;  %v5107_v37 = vpop.f32.mrf.mxu1 }
 0x691   : > { %4031 = vst.msk [vmem:[%s7176_s11 + $0x10] sm:$0xff] %vm4028_vm7, %v3880_v35  ;;  %v3895_v13 = vadd.f32 %v5080_v1, %v6837_v44  ;;  %4049 = vst.msk [vmem:[%s7176_s11 + $0xa0] sm:$0xff] %vm4028_vm7, %v3970_v42  ;;  %v3985_v10 = vadd.f32 %v5107_v37, %v6837_v44 }
 0x692   : > { %v3889_v31 = vpop.f32.mrf.mxu0  ;;  %v3979_v22 = vpop.f32.mrf.mxu1 }
 0x693   : > { %4034 = vst.msk [vmem:[%s7176_s11 + $0x28] sm:$0xff] %vm4028_vm7, %v3895_v13  ;;  %v3890_v50 = vadd.f32 %v6837_v44, %v3889_v31  ;;  %4052 = vst.msk [vmem:[%s7176_s11 + $0xb8] sm:$0xff] %vm4028_vm7, %v3985_v10  ;;  %v3980_v11 = vadd.f32 %v6837_v44, %v3979_v22 }
 0x694   : > { %v5083_v45 = vpop.f32.mrf.mxu0  ;;  %v5110_v57 = vpop.f32.mrf.mxu1 }
 0x695   : > { %4033 = vst.msk [vmem:[%s7176_s11 + $0x20] sm:$0xff] %vm4028_vm7, %v3890_v50  ;;  %v3905_v7 = vadd.f32 %v5083_v45, %v6837_v44  ;;  %4051 = vst.msk [vmem:[%s7176_s11 + $0xb0] sm:$0xff] %vm4028_vm7, %v3980_v11  ;;  %v3995_v58 = vadd.f32 %v5110_v57, %v6837_v44 }
 0x696   : > { %v3899_v0 = vpop.f32.mrf.mxu0  ;;  %v3989_v15 = vpop.f32.mrf.mxu1 }
 0x697   : > { %4036 = vst.msk [vmem:[%s7176_s11 + $0x38] sm:$0xff] %vm4028_vm7, %v3905_v7  ;;  %v3900_v34 = vadd.f32 %v6837_v44, %v3899_v0  ;;  %4054 = vst.msk [vmem:[%s7176_s11 + $0xc8] sm:$0xff] %vm4028_vm7, %v3995_v58  ;;  %v3990_v14 = vadd.f32 %v6837_v44, %v3989_v15 }
 0x698   : > { %v5086_v17 = vpop.f32.mrf.mxu0  ;;  %v5113_v43 = vpop.f32.mrf.mxu1 }
 0x699   : > { %4035 = vst.msk [vmem:[%s7176_s11 + $0x30] sm:$0xff] %vm4028_vm7, %v3900_v34  ;;  %v3915_v19 = vadd.f32 %v5086_v17, %v6837_v44  ;;  %4053 = vst.msk [vmem:[%s7176_s11 + $0xc0] sm:$0xff] %vm4028_vm7, %v3990_v14  ;;  %v4005_v55 = vadd.f32 %v5113_v43, %v6837_v44 }
 0x69a   : > { %v3909_v8 = vpop.f32.mrf.mxu0  ;;  %v3999_v62 = vpop.f32.mrf.mxu1 }
 0x69b   : > { %4038 = vst.msk [vmem:[%s7176_s11 + $0x48] sm:$0xff] %vm4028_vm7, %v3915_v19  ;;  %v3910_v46 = vadd.f32 %v6837_v44, %v3909_v8  ;;  %4056 = vst.msk [vmem:[%s7176_s11 + $0xd8] sm:$0xff] %vm4028_vm7, %v4005_v55  ;;  %v4000_v3 = vadd.f32 %v6837_v44, %v3999_v62 }
 0x69c   : > { %v5089_v54 = vpop.f32.mrf.mxu0  ;;  %v5116_v25 = vpop.f32.mrf.mxu1 }
 0x69d   : > { %4037 = vst.msk [vmem:[%s7176_s11 + $0x40] sm:$0xff] %vm4028_vm7, %v3910_v46  ;;  %v3925_v40 = vadd.f32 %v5089_v54, %v6837_v44  ;;  %4055 = vst.msk [vmem:[%s7176_s11 + $0xd0] sm:$0xff] %vm4028_vm7, %v4000_v3  ;;  %v4015_v16 = vadd.f32 %v5116_v25, %v6837_v44 }
 0x69e   : > { %v3919_v6 = vpop.f32.mrf.mxu0  ;;  %v4009_v63 = vpop.f32.mrf.mxu1 }
 0x69f   : > { %4040 = vst.msk [vmem:[%s7176_s11 + $0x58] sm:$0xff] %vm4028_vm7, %v3925_v40  ;;  %v3920_v39 = vadd.f32 %v6837_v44, %v3919_v6  ;;  %4058 = vst.msk [vmem:[%s7176_s11 + $0xe8] sm:$0xff] %vm4028_vm7, %v4015_v16  ;;  %v4010_v36 = vadd.f32 %v6837_v44, %v4009_v63 }
 0x6a0   : > { %v5092_v23 = vpop.f32.mrf.mxu0  ;;  %v5119_v41 = vpop.f32.mrf.mxu1 }
 0x6a1   : > { %4039 = vst.msk [vmem:[%s7176_s11 + $0x50] sm:$0xff] %vm4028_vm7, %v3920_v39  ;;  %v3935_v47 = vadd.f32 %v5092_v23, %v6837_v44  ;;  %4057 = vst.msk [vmem:[%s7176_s11 + $0xe0] sm:$0xff] %vm4028_vm7, %v4010_v36  ;;  %v4025_v48 = vadd.f32 %v5119_v41, %v6837_v44 }
 0x6a2   : > { %v3929_v59 = vpop.f32.mrf.mxu0  ;;  %v4019_v28 = vpop.f32.mrf.mxu1 }
 0x6a3   : > { %4042 = vst.msk [vmem:[%s7176_s11 + $0x68] sm:$0xff] %vm4028_vm7, %v3935_v47  ;;  %v3930_v29 = vadd.f32 %v6837_v44, %v3929_v59  ;;  %4060 = vst.msk [vmem:[%s7176_s11 + $0xf8] sm:$0xff] %vm4028_vm7, %v4025_v48  ;;  %v4020_v32 = vadd.f32 %v6837_v44, %v4019_v28 }
 0x6a5   : > { %4041 = vst.msk [vmem:[%s7176_s11 + $0x60] sm:$0xff] %vm4028_vm7, %v3930_v29  ;;  %4059 = vst.msk [vmem:[%s7176_s11 + $0xf0] sm:$0xff] %vm4028_vm7, %v4020_v32 }
 0x6a6 PF: > { %s7177_s2 = sld [smem:[#allocation4_spill]] }
 0x6ac   : > { %s34_s4 = sadd.s32 1, %s7177_s2  }
 0x6ad   : > { %p31_p6 = scmp.ge.s32.totalorder %s34_s4, 4  }
 0x6af   :  { %33 = sbr.rel (!%p31_p6) target bundleno = 14 (0xe), region = 174 }

</bundles_post_ra>
